<compile_context>
chip_gen: v6e
topology: v6e:2x2x1
jax: 0.10.0
libtpu: 0.0.40
codegen_flags: <defaults>
</compile_context>

<pallas_src>
import jax
import jax.numpy as jnp
from jax import lax
from jax.experimental import pallas as pl
from jax.experimental.pallas import tpu as pltpu

EPS = 1e-3  # BatchNorm2d(eps=0.001)


def _fused_kernel(scale_ref, x_ref, w1_ref, gamma_ref, beta_ref, res_ref, w2_ref, o_ref):
    # scale_ref: (1, 672)    per-channel multiplier (x130), valid because N == 1
    # x_ref:     (672, P)    input feature map, channels x pixels (zero-copy NCHW view)
    # w1_ref:    (112, 672)  conv2d45 weight
    # gamma_ref: (112, 1)    batchnorm weight
    # beta_ref:  (112, 1)    batchnorm bias
    # res_ref:   (112, P)    residual (x119)
    # w2_ref:    (672, 112)  conv2d46 weight
    # o_ref:     (672, P)    output

    # Fold the per-channel scale into W1 (cheaper than scaling x); bf16 MXU operands.
    w1 = (w1_ref[...] * scale_ref[...]).astype(jnp.bfloat16)          # (112, 672)
    x = x_ref[...].astype(jnp.bfloat16)                               # (672, P)

    # 1x1 conv #1:  (112, 672) @ (672, P) -> (112, P), f32 accumulate
    y = jnp.dot(w1, x, preferred_element_type=jnp.float32)

    # BatchNorm2d (training mode): one-pass biased batch stats per channel (row).
    inv_p = 1.0 / y.shape[1]
    mean = jnp.sum(y, axis=1, keepdims=True) * inv_p                  # (112, 1)
    sumsq = jnp.sum(y * y, axis=1, keepdims=True) * inv_p             # (112, 1)
    var = sumsq - mean * mean
    a = lax.rsqrt(var + EPS) * gamma_ref[...]                         # (112, 1)
    b = beta_ref[...] - mean * a                                      # (112, 1)

    # Folded affine + residual add: one FMA + one add per element.
    z = (y * a + b + res_ref[...]).astype(jnp.bfloat16)               # (112, P)

    # 1x1 conv #2:  (672, 112) @ (112, P) -> (672, P), f32 accumulate
    o_ref[...] = jnp.dot(w2_ref[...].astype(jnp.bfloat16), z,
                         preferred_element_type=jnp.float32)


def fused_forward(x130, x125, x119, w45, gamma, beta, w46):
    """x130:(N,672,1,1)  x125:(N,672,H,W)  x119:(N,112,H,W)
       w45:(112,672,1,1) gamma/beta:(112,) w46:(672,112,1,1)
       returns (N,672,H,W). Requires N == 1 (as in the reference module)."""
    N, C_in, H, W = x125.shape
    C_mid = w45.shape[0]
    P = H * W

    if N != 1:
        # Per-sample scale could no longer be folded into W1 and the single
        # (C, P) zero-copy view would not exist; would need a grid over N.
        raise NotImplementedError("fused_forward assumes N == 1")

    # Zero-copy views: NCHW with N==1 is already (C, H*W); no transposes.
    x_cp = x125.reshape(C_in, P)
    res_cp = x119.reshape(C_mid, P)
    scale = x130.reshape(1, C_in)
    w1 = w45.reshape(C_mid, C_in)
    w2 = w46.reshape(C_in, C_mid)
    gamma_c = gamma.reshape(C_mid, 1)
    beta_c = beta.reshape(C_mid, 1)

    vmem = pl.BlockSpec(memory_space=pltpu.MemorySpace.VMEM)
    bytes_accessed = 4 * (2 * C_in * P + C_mid * P + 2 * C_in * C_mid + C_in + 2 * C_mid)
    cost = pl.CostEstimate(
        flops=2 * 2 * P * C_in * C_mid,   # two matmuls
        transcendentals=C_mid,            # rsqrt per channel
        bytes_accessed=bytes_accessed,
    )

    out_cp = pl.pallas_call(
        _fused_kernel,
        out_shape=jax.ShapeDtypeStruct((C_in, P), jnp.float32),
        in_specs=[vmem] * 7,
        out_specs=vmem,
        cost_estimate=cost,
    )(scale, x_cp, w1, gamma_c, beta_c, res_cp, w2)

    # TODO(synk): for much larger H*W (or on v7x with 2 TCs / 64 MiB VMEM),
    # tile the pixel axis with a "parallel" grid and switch BN to a two-pass
    # (global-stats) scheme; at P=196 a single whole-slab block is optimal.
    return out_cp.reshape(N, C_in, H, W)


def reference_forward(x130, x125, x119, w45, gamma, beta, w46):
    """Pure-JAX f32 reference mirroring the PyTorch module (training-mode BN)."""
    x131 = x130 * x125
    x132 = jnp.einsum("nchw,oc->nohw", x131, w45.reshape(112, 672))
    mean = jnp.mean(x132, axis=(0, 2, 3), keepdims=True)
    var = jnp.var(x132, axis=(0, 2, 3), keepdims=True)  # biased, as in BN forward
    x133 = (x132 - mean) / jnp.sqrt(var + EPS) * gamma.reshape(1, -1, 1, 1) + beta.reshape(1, -1, 1, 1)
    x134 = x133 + x119
    x135 = jnp.einsum("nchw,oc->nohw", x134, w46.reshape(672, 112))
    return x135


if __name__ == "__main__":
    key = jax.random.PRNGKey(0)
    k = jax.random.split(key, 6)

    N, H, W = 1, 14, 14
    C_in, C_mid = 672, 112

    x130 = jax.random.normal(k[0], (N, C_in, 1, 1), dtype=jnp.float32)
    x125 = jax.random.normal(k[1], (N, C_in, H, W), dtype=jnp.float32)
    x119 = jax.random.normal(k[2], (N, C_mid, H, W), dtype=jnp.float32)

    # deterministic synthetic parameters (no checkpoint load)
    w45 = jax.random.normal(k[3], (C_mid, C_in, 1, 1), dtype=jnp.float32) * 0.05
    w46 = jax.random.normal(k[4], (C_in, C_mid, 1, 1), dtype=jnp.float32) * 0.05
    gb = jax.random.normal(k[5], (2, C_mid), dtype=jnp.float32) * 0.1
    gamma = 1.0 + gb[0]
    beta = gb[1]

    out = fused_forward(x130, x125, x119, w45, gamma, beta, w46)
    out = jax.block_until_ready(out)

    ref = reference_forward(x130, x125, x119, w45, gamma, beta, w46)
    assert out.shape == (N, C_in, H, W)
    # bf16 MXU operands -> slightly looser tolerance than a pure-f32 pipeline
    assert jnp.allclose(out, ref, atol=5e-2, rtol=5e-2), float(jnp.max(jnp.abs(out - ref)))

    print("KERNEL_OK")
</pallas_src>

<mosaic_0001>
module attributes {stable_mosaic.version = 11 : i64} {
  func.func @_fused_kernel(%arg0: memref<1x672xf32, #tpu.memory_space<vmem>>, %arg1: memref<672x196xf32, #tpu.memory_space<vmem>>, %arg2: memref<112x672xf32, #tpu.memory_space<vmem>>, %arg3: memref<112x1xf32, #tpu.memory_space<vmem>>, %arg4: memref<112x1xf32, #tpu.memory_space<vmem>>, %arg5: memref<112x196xf32, #tpu.memory_space<vmem>>, %arg6: memref<672x112xf32, #tpu.memory_space<vmem>>, %arg7: memref<672x196xf32, #tpu.memory_space<vmem>>) attributes {dimension_semantics = [], scalar_prefetch = 0 : i64, scratch_operands = 0 : i64, tpu.core_type = #tpu.core_type<tc>} {
    %c0 = arith.constant 0 : index
    %c0_0 = arith.constant 0 : index
    %0 = vector.load %arg2[%c0, %c0_0] : memref<112x672xf32, #tpu.memory_space<vmem>>, vector<112x672xf32>
    %c0_1 = arith.constant 0 : index
    %c0_2 = arith.constant 0 : index
    %1 = vector.load %arg0[%c0_1, %c0_2] : memref<1x672xf32, #tpu.memory_space<vmem>>, vector<1x672xf32>
    %2 = vector.broadcast %1 : vector<1x672xf32> to vector<112x672xf32>
    %3 = arith.mulf %0, %2 : vector<112x672xf32>
    %4 = arith.truncf %3 : vector<112x672xf32> to vector<112x672xbf16>
    %c0_3 = arith.constant 0 : index
    %c0_4 = arith.constant 0 : index
    %5 = vector.load %arg1[%c0_3, %c0_4] : memref<672x196xf32, #tpu.memory_space<vmem>>, vector<672x196xf32>
    %6 = arith.truncf %5 : vector<672x196xf32> to vector<672x196xbf16>
    %cst = arith.constant dense<0.000000e+00> : vector<112x196xf32>
    %7 = tpu.matmul %4, %6, %cst {dimension_numbers = #tpu.dot_dimension_numbers<[1], [0], [0], [1], [0, 0, 1, 1], [], []>} : vector<112x672xbf16>, vector<672x196xbf16>, vector<112x196xf32> -> vector<112x196xf32>
    %cst_5 = arith.constant dense<0.000000e+00> : vector<112xf32>
    %8 = vector.multi_reduction <add>, %7, %cst_5 [1] : vector<112x196xf32> to vector<112xf32>
    %9 = vector.shape_cast %8 : vector<112xf32> to vector<112x1xf32>
    %cst_6 = arith.constant 0.00510204071 : f32
    %10 = vector.broadcast %cst_6 : f32 to vector<112x1xf32>
    %11 = arith.mulf %9, %10 : vector<112x1xf32>
    %12 = arith.mulf %7, %7 : vector<112x196xf32>
    %cst_7 = arith.constant dense<0.000000e+00> : vector<112xf32>
    %13 = vector.multi_reduction <add>, %12, %cst_7 [1] : vector<112x196xf32> to vector<112xf32>
    %14 = vector.shape_cast %13 : vector<112xf32> to vector<112x1xf32>
    %cst_8 = arith.constant 0.00510204071 : f32
    %15 = vector.broadcast %cst_8 : f32 to vector<112x1xf32>
    %16 = arith.mulf %14, %15 : vector<112x1xf32>
    %17 = arith.mulf %11, %11 : vector<112x1xf32>
    %18 = arith.subf %16, %17 : vector<112x1xf32>
    %cst_9 = arith.constant 1.000000e-03 : f32
    %19 = vector.broadcast %cst_9 : f32 to vector<112x1xf32>
    %20 = arith.addf %18, %19 : vector<112x1xf32>
    %21 = math.rsqrt %20 : vector<112x1xf32>
    %c0_10 = arith.constant 0 : index
    %c0_11 = arith.constant 0 : index
    %22 = vector.load %arg3[%c0_10, %c0_11] : memref<112x1xf32, #tpu.memory_space<vmem>>, vector<112x1xf32>
    %23 = arith.mulf %21, %22 : vector<112x1xf32>
    %c0_12 = arith.constant 0 : index
    %c0_13 = arith.constant 0 : index
    %24 = vector.load %arg4[%c0_12, %c0_13] : memref<112x1xf32, #tpu.memory_space<vmem>>, vector<112x1xf32>
    %25 = arith.mulf %11, %23 : vector<112x1xf32>
    %26 = arith.subf %24, %25 : vector<112x1xf32>
    %27 = vector.broadcast %23 : vector<112x1xf32> to vector<112x196xf32>
    %28 = arith.mulf %7, %27 : vector<112x196xf32>
    %29 = vector.broadcast %26 : vector<112x1xf32> to vector<112x196xf32>
    %30 = arith.addf %28, %29 : vector<112x196xf32>
    %c0_14 = arith.constant 0 : index
    %c0_15 = arith.constant 0 : index
    %31 = vector.load %arg5[%c0_14, %c0_15] : memref<112x196xf32, #tpu.memory_space<vmem>>, vector<112x196xf32>
    %32 = arith.addf %30, %31 : vector<112x196xf32>
    %33 = arith.truncf %32 : vector<112x196xf32> to vector<112x196xbf16>
    %c0_16 = arith.constant 0 : index
    %c0_17 = arith.constant 0 : index
    %34 = vector.load %arg6[%c0_16, %c0_17] : memref<672x112xf32, #tpu.memory_space<vmem>>, vector<672x112xf32>
    %35 = arith.truncf %34 : vector<672x112xf32> to vector<672x112xbf16>
    %cst_18 = arith.constant dense<0.000000e+00> : vector<672x196xf32>
    %36 = tpu.matmul %35, %33, %cst_18 {dimension_numbers = #tpu.dot_dimension_numbers<[1], [0], [0], [1], [0, 0, 1, 1], [], []>} : vector<672x112xbf16>, vector<112x196xbf16>, vector<672x196xf32> -> vector<672x196xf32>
    %c0_19 = arith.constant 0 : index
    %c0_20 = arith.constant 0 : index
    %37 = vector.load %arg7[%c0_19, %c0_20] : memref<672x196xf32, #tpu.memory_space<vmem>>, vector<672x196xf32>
    tpu.vector_store %arg7[%c0_19, %c0_20], %36 {strides = array<i32>} : memref<672x196xf32, #tpu.memory_space<vmem>>, vector<672x196xf32>,
    return
  }
}

</mosaic_0001>

<bundles_post_ra>
// kernel: tpu_custom_call.1
= control target key start
LH: loop header
LB: loop body
LE: loop exit
PB: predicated region body
PF: predicated region fallthrough
CT: control target
= control target key end

     0   :  { %vm521_vm0 = vcmask 261120   ;;  %vm852_vm1 = vcmask 556032   ;;  %vm1539_vm2 = vcmask 916480   ;;  %s5094_s1 = inlined_call_operand.vmem [shape: f32[672,196], index: 1, kind: input, shape index: {}]   ;;  %s5095_s2 = inlined_call_operand.vmem [shape: f32[112,672], index: 2, kind: input, shape index: {}]   ;;  %s5096_s0 = inlined_call_operand.vmem [shape: f32[1,672], index: 0, kind: input, shape index: {}]   ;;  %s5097_s3 = inlined_call_operand.vmem [shape: f32[112,1], index: 3, kind: input, shape index: {}]   ;;  %s5098_s4 = inlined_call_operand.vmem [shape: f32[112,1], index: 4, kind: input, shape index: {}]   ;;  %s5099_s5 = inlined_call_operand.vmem [shape: f32[112,196], index: 5, kind: input, shape index: {}]   ;;  %s5100_s6 = inlined_call_operand.vmem [shape: f32[672,112], index: 6, kind: input, shape index: {}]   ;;  %s5101_s7 = inlined_call_operand.vmem [shape: f32[672,196], index: 7, kind: output, shape index: {}]  }
   0x1   :  { %v298_v0 = vld [vmem:[%s5094_s1 + $0xe8] sm:$0xff]  ;;  %v300_v1 = vld [vmem:[%s5094_s1 + $0xf8] sm:$0xff]  ;;  %v297_v5 = vld [vmem:[%s5094_s1 + $0xe0] sm:$0xff] }
   0x2   :  { %v362_v2 = vld [vmem:[%s5094_s1 + $0x2e8] sm:$0xff]  ;;  %v452_v3 = vpack.c.bf16 %v300_v1, %v298_v0  ;;  %v364_v4 = vld [vmem:[%s5094_s1 + $0x2f8] sm:$0xff]  ;;  %v299_v6 = vld [vmem:[%s5094_s1 + $0xf0] sm:$0xff] }
   0x3   :  { %v484_v7 = vpack.c.bf16 %v364_v4, %v362_v2  ;;  %v451_v8 = vpack.c.bf16 %v299_v6, %v297_v5  ;;  %v361_v9 = vld [vmem:[%s5094_s1 + $0x2e0] sm:$0xff]  ;;  %v363_v10 = vld [vmem:[%s5094_s1 + $0x2f0] sm:$0xff]  ;;  %v294_v11 = vld [vmem:[%s5094_s1 + $0xc8] sm:$0xff] }
   0x4   :  { %543 = vmatprep.subr.bf16.mxu0 %v452_v3  ;;  %v483_v12 = vpack.c.bf16 %v363_v10, %v361_v9  ;;  %v296_v13 = vld [vmem:[%s5094_s1 + $0xd8] sm:$0xff]  ;;  %v358_v14 = vld [vmem:[%s5094_s1 + $0x2c8] sm:$0xff]  ;;  %v293_v18 = vld [vmem:[%s5094_s1 + $0xc0] sm:$0xff] }
   0x5   :  { %v360_v15 = vld [vmem:[%s5094_s1 + $0x2d8] sm:$0xff]  ;;  %646 = vmatprep.subr.bf16.mxu1 %v484_v7  ;;  %544 = vmatpush1.bf16.msra.mxu0 %v451_v8  ;;  %v450_v16 = vpack.c.bf16 %v296_v13, %v294_v11  ;;  %v295_v19 = vld [vmem:[%s5094_s1 + $0xd0] sm:$0xff]  ;;  %v357_v20 = vld [vmem:[%s5094_s1 + $0x2c0] sm:$0xff] }
   0x6   :  { %v482_v17 = vpack.c.bf16 %v360_v15, %v358_v14  ;;  %647 = vmatpush1.bf16.msra.mxu1 %v483_v12  ;;  %v449_v21 = vpack.c.bf16 %v295_v19, %v293_v18  ;;  %v359_v22 = vld [vmem:[%s5094_s1 + $0x2d0] sm:$0xff]  ;;  %v290_v23 = vld [vmem:[%s5094_s1 + $0xa8] sm:$0xff]  ;;  %v292_v24 = vld [vmem:[%s5094_s1 + $0xb8] sm:$0xff] }
   0x7   :  { %545 = vmatprep.subr.bf16.mxu0 %v450_v16  ;;  %v481_v25 = vpack.c.bf16 %v359_v22, %v357_v20  ;;  %v448_v26 = vpack.c.bf16 %v292_v24, %v290_v23  ;;  %v354_v27 = vld [vmem:[%s5094_s1 + $0x2a8] sm:$0xff]  ;;  %v356_v28 = vld [vmem:[%s5094_s1 + $0x2b8] sm:$0xff]  ;;  %v289_v29 = vld [vmem:[%s5094_s1 + $0xa0] sm:$0xff] }
   0x8   :  { %648 = vmatprep.subr.bf16.mxu1 %v482_v17  ;;  %v480_v30 = vpack.c.bf16 %v356_v28, %v354_v27  ;;  %v291_v31 = vld [vmem:[%s5094_s1 + $0xb0] sm:$0xff]  ;;  %v353_v32 = vld [vmem:[%s5094_s1 + $0x2a0] sm:$0xff]  ;;  %v286_v35 = vld [vmem:[%s5094_s1 + $0x88] sm:$0xff] }
   0x9   :  { %v355_v33 = vld [vmem:[%s5094_s1 + $0x2b0] sm:$0xff]  ;;  %546 = vmatpush1.bf16.msra.mxu0 %v449_v21  ;;  %v447_v34 = vpack.c.bf16 %v291_v31, %v289_v29  ;;  %v288_v36 = vld [vmem:[%s5094_s1 + $0x98] sm:$0xff]  ;;  %v350_v37 = vld [vmem:[%s5094_s1 + $0x288] sm:$0xff] }
   0xa   :  { %649 = vmatpush1.bf16.msra.mxu1 %v481_v25  ;;  %547 = vmatprep.subr.bf16.mxu0 %v448_v26  ;;  %v479_v38 = vpack.c.bf16 %v355_v33, %v353_v32  ;;  %v446_v39 = vpack.c.bf16 %v288_v36, %v286_v35  ;;  %v352_v40 = vld [vmem:[%s5094_s1 + $0x298] sm:$0xff]  ;;  %v285_v41 = vld [vmem:[%s5094_s1 + $0x80] sm:$0xff]  ;;  %v287_v42 = vld [vmem:[%s5094_s1 + $0x90] sm:$0xff] }
   0xb   :  { %650 = vmatprep.subr.bf16.mxu1 %v480_v30  ;;  %v478_v43 = vpack.c.bf16 %v352_v40, %v350_v37  ;;  %v349_v44 = vld [vmem:[%s5094_s1 + $0x280] sm:$0xff]  ;;  %v351_v45 = vld [vmem:[%s5094_s1 + $0x290] sm:$0xff]  ;;  %v282_v46 = vld [vmem:[%s5094_s1 + $0x68] sm:$0xff]  ;;  %v445_v50 = vpack.c.bf16 %v287_v42, %v285_v41 }
   0xc   :  { %v284_v47 = vld [vmem:[%s5094_s1 + $0x78] sm:$0xff]  ;;  %v346_v48 = vld [vmem:[%s5094_s1 + $0x268] sm:$0xff]  ;;  %v477_v51 = vpack.c.bf16 %v351_v45, %v349_v44  ;;  %v281_v53 = vld [vmem:[%s5094_s1 + $0x60] sm:$0xff] }
   0xd   :  { %v348_v49 = vld [vmem:[%s5094_s1 + $0x278] sm:$0xff]  ;;  %548 = vmatpush1.bf16.msra.mxu0 %v447_v34  ;;  %v444_v52 = vpack.c.bf16 %v284_v47, %v282_v46  ;;  %v283_v54 = vld [vmem:[%s5094_s1 + $0x70] sm:$0xff]  ;;  %v345_v55 = vld [vmem:[%s5094_s1 + $0x260] sm:$0xff]  ;;  %v113_v47 = vlaneseq }
   0xe   :  { %651 = vmatpush1.bf16.msra.mxu1 %v479_v38  ;;  %549 = vmatprep.subr.bf16.mxu0 %v446_v39  ;;  %v476_v56 = vpack.c.bf16 %v348_v49, %v346_v48  ;;  %v347_v57 = vld [vmem:[%s5094_s1 + $0x270] sm:$0xff]  ;;  %v278_v58 = vld [vmem:[%s5094_s1 + $0x48] sm:$0xff]  ;;  %v280_v59 = vld [vmem:[%s5094_s1 + $0x58] sm:$0xff]  ;;  %v443_v62 = vpack.c.bf16 %v283_v54, %v281_v53 }
   0xf   :  { %652 = vmatprep.subr.bf16.mxu1 %v478_v43  ;;  %v342_v60 = vld [vmem:[%s5094_s1 + $0x248] sm:$0xff]  ;;  %v344_v61 = vld [vmem:[%s5094_s1 + $0x258] sm:$0xff]  ;;  %v475_v63 = vpack.c.bf16 %v347_v57, %v345_v55  ;;  %v442_v0 = vpack.c.bf16 %v280_v59, %v278_v58  ;;  %v277_v1 = vld [vmem:[%s5094_s1 + $0x40] sm:$0xff] }
  0x10   :  { %v279_v2 = vld [vmem:[%s5094_s1 + $0x50] sm:$0xff]  ;;  %v341_v3 = vld [vmem:[%s5094_s1 + $0x240] sm:$0xff]  ;;  %v474_v4 = vpack.c.bf16 %v344_v61, %v342_v60  ;;  %v274_v6 = vld [vmem:[%s5094_s1 + $0x28] sm:$0xff]  ;;  %v2678_v60 = vshrl.u32 %v113_v47, 7 }
  0x11   :  { %550 = vmatpush1.bf16.msra.mxu0 %v445_v50  ;;  %v343_v5 = vld [vmem:[%s5094_s1 + $0x250] sm:$0xff]  ;;  %v276_v7 = vld [vmem:[%s5094_s1 + $0x38] sm:$0xff]  ;;  %v338_v8 = vld [vmem:[%s5094_s1 + $0x228] sm:$0xff]  ;;  %v441_v10 = vpack.c.bf16 %v279_v2, %v277_v1 }
  0x12   :  { %653 = vmatpush1.bf16.msra.mxu1 %v477_v51  ;;  %551 = vmatprep.subr.bf16.mxu0 %v444_v52  ;;  %v340_v9 = vld [vmem:[%s5094_s1 + $0x238] sm:$0xff]  ;;  %v473_v11 = vpack.c.bf16 %v343_v5, %v341_v3  ;;  %v440_v12 = vpack.c.bf16 %v276_v7, %v274_v6  ;;  %v273_v13 = vld [vmem:[%s5094_s1 + $0x20] sm:$0xff]  ;;  %v275_v14 = vld [vmem:[%s5094_s1 + $0x30] sm:$0xff] }
  0x13   :  { %654 = vmatprep.subr.bf16.mxu1 %v476_v56  ;;  %v337_v15 = vld [vmem:[%s5094_s1 + $0x220] sm:$0xff]  ;;  %v472_v16 = vpack.c.bf16 %v340_v9, %v338_v8  ;;  %v339_v17 = vld [vmem:[%s5094_s1 + $0x230] sm:$0xff]  ;;  %v270_v18 = vld [vmem:[%s5094_s1 + $0x8] sm:$0xff]  ;;  %v439_v22 = vpack.c.bf16 %v275_v14, %v273_v13  ;;  %v127_v13 = vsub.s32 3, %v2678_v60 }
  0x14   :  { %v272_v19 = vld [vmem:[%s5094_s1 + $0x18] sm:$0xff]  ;;  %v334_v20 = vld [vmem:[%s5094_s1 + $0x208] sm:$0xff]  ;;  %v471_v23 = vpack.c.bf16 %v339_v17, %v337_v15  ;;  %v269_v25 = vld [vmem:[%s5094_s1] sm:$0xff] }
  0x15   :  { %552 = vmatpush1.bf16.msra.mxu0 %v443_v62  ;;  %v336_v21 = vld [vmem:[%s5094_s1 + $0x218] sm:$0xff]  ;;  %v438_v24 = vpack.c.bf16 %v272_v19, %v270_v18  ;;  %v271_v26 = vld [vmem:[%s5094_s1 + $0x10] sm:$0xff]  ;;  %v333_v27 = vld [vmem:[%s5094_s1 + $0x200] sm:$0xff]  ;;  %v135_v19 = vsub.s32 5, %v2678_v60 }
  0x16   :  { %655 = vmatpush1.bf16.msra.mxu1 %v475_v63  ;;  %553 = vmatprep.subr.bf16.mxu0 %v442_v0  ;;  %v470_v28 = vpack.c.bf16 %v336_v21, %v334_v20  ;;  %v335_v29 = vld [vmem:[%s5094_s1 + $0x210] sm:$0xff]  ;;  %v330_v30 = vld [vmem:[%s5094_s1 + $0x1e8] sm:$0xff]  ;;  %v332_v31 = vld [vmem:[%s5094_s1 + $0x1f8] sm:$0xff]  ;;  %v437_v34 = vpack.c.bf16 %v271_v26, %v269_v25  ;;  %v131_v20 = vsub.s32 4, %v2678_v60 }
  0x17   :  { %656 = vmatprep.subr.bf16.mxu1 %v474_v4  ;;  %v394_v32 = vld [vmem:[%s5094_s1 + $0x3e8] sm:$0xff]  ;;  %v396_v33 = vld [vmem:[%s5094_s1 + $0x3f8] sm:$0xff]  ;;  %v469_v35 = vpack.c.bf16 %v335_v29, %v333_v27  ;;  %v468_v36 = vpack.c.bf16 %v332_v31, %v330_v30  ;;  %v329_v37 = vld [vmem:[%s5094_s1 + $0x1e0] sm:$0xff] }
  0x18   :  { %v331_v38 = vld [vmem:[%s5094_s1 + $0x1f0] sm:$0xff]  ;;  %v393_v39 = vld [vmem:[%s5094_s1 + $0x3e0] sm:$0xff]  ;;  %v500_v40 = vpack.c.bf16 %v396_v33, %v394_v32  ;;  %v326_v42 = vld [vmem:[%s5094_s1 + $0x1c8] sm:$0xff] }
  0x19   :  { %554 = vmatpush1.bf16.msra.mxu0 %v441_v10  ;;  %v395_v41 = vld [vmem:[%s5094_s1 + $0x3f0] sm:$0xff]  ;;  %v328_v43 = vld [vmem:[%s5094_s1 + $0x1d8] sm:$0xff]  ;;  %v390_v44 = vld [vmem:[%s5094_s1 + $0x3c8] sm:$0xff]  ;;  %v467_v46 = vpack.c.bf16 %v331_v38, %v329_v37 }
  0x1a   :  { %657 = vmatpush1.bf16.msra.mxu1 %v473_v11  ;;  %555 = vmatprep.subr.bf16.mxu0 %v440_v12  ;;  %v392_v45 = vld [vmem:[%s5094_s1 + $0x3d8] sm:$0xff]  ;;  %v499_v48 = vpack.c.bf16 %v395_v41, %v393_v39  ;;  %v466_v49 = vpack.c.bf16 %v328_v43, %v326_v42  ;;  %v325_v50 = vld [vmem:[%s5094_s1 + $0x1c0] sm:$0xff]  ;;  %v327_v51 = vld [vmem:[%s5094_s1 + $0x1d0] sm:$0xff]  ;;  %v119_v12 = vsub.s32 1, %v2678_v60 }
  0x1b   :  { %658 = vmatprep.subr.bf16.mxu1 %v472_v16  ;;  %v389_v52 = vld [vmem:[%s5094_s1 + $0x3c0] sm:$0xff]  ;;  %v498_v53 = vpack.c.bf16 %v392_v45, %v390_v44  ;;  %v391_v54 = vld [vmem:[%s5094_s1 + $0x3d0] sm:$0xff]  ;;  %v322_v55 = vld [vmem:[%s5094_s1 + $0x1a8] sm:$0xff]  ;;  %v465_v59 = vpack.c.bf16 %v327_v51, %v325_v50 }
  0x1c   :  { %v324_v56 = vld [vmem:[%s5094_s1 + $0x1b8] sm:$0xff]  ;;  %v386_v57 = vld [vmem:[%s5094_s1 + $0x3a8] sm:$0xff]  ;;  %v497_v61 = vpack.c.bf16 %v391_v54, %v389_v52  ;;  %v321_v63 = vld [vmem:[%s5094_s1 + $0x1a0] sm:$0xff] }
  0x1d   :  { %556 = vmatpush1.bf16.msra.mxu0 %v439_v22  ;;  %v388_v58 = vld [vmem:[%s5094_s1 + $0x3b8] sm:$0xff]  ;;  %v464_v62 = vpack.c.bf16 %v324_v56, %v322_v55  ;;  %v323_v0 = vld [vmem:[%s5094_s1 + $0x1b0] sm:$0xff]  ;;  %v385_v1 = vld [vmem:[%s5094_s1 + $0x3a0] sm:$0xff] }
  0x1e   :  { %659 = vmatpush1.bf16.msra.mxu1 %v471_v23  ;;  %557 = vmatprep.subr.bf16.mxu0 %v438_v24  ;;  %v496_v2 = vpack.c.bf16 %v388_v58, %v386_v57  ;;  %v387_v3 = vld [vmem:[%s5094_s1 + $0x3b0] sm:$0xff]  ;;  %v318_v4 = vld [vmem:[%s5094_s1 + $0x188] sm:$0xff]  ;;  %v320_v5 = vld [vmem:[%s5094_s1 + $0x198] sm:$0xff]  ;;  %v463_v8 = vpack.c.bf16 %v323_v0, %v321_v63 }
  0x1f   :  { %660 = vmatprep.subr.bf16.mxu1 %v470_v28  ;;  %v382_v6 = vld [vmem:[%s5094_s1 + $0x388] sm:$0xff]  ;;  %v384_v7 = vld [vmem:[%s5094_s1 + $0x398] sm:$0xff]  ;;  %v317_v9 = vld [vmem:[%s5094_s1 + $0x180] sm:$0xff]  ;;  %v495_v14 = vpack.c.bf16 %v387_v3, %v385_v1  ;;  %v462_v15 = vpack.c.bf16 %v320_v5, %v318_v4  ;;  %v123_v1 = vsub.s32 2, %v2678_v60 }
  0x20   :  { %v319_v10 = vld [vmem:[%s5094_s1 + $0x190] sm:$0xff]  ;;  %v381_v11 = vld [vmem:[%s5094_s1 + $0x380] sm:$0xff]  ;;  %v314_v17 = vld [vmem:[%s5094_s1 + $0x168] sm:$0xff]  ;;  %v494_v21 = vpack.c.bf16 %v384_v7, %v382_v6 }
  0x21   :  { %558 = vmatpush1.bf16.msra.mxu0 %v437_v34  ;;  %v383_v16 = vld [vmem:[%s5094_s1 + $0x390] sm:$0xff]  ;;  %v316_v18 = vld [vmem:[%s5094_s1 + $0x178] sm:$0xff]  ;;  %v378_v22 = vld [vmem:[%s5094_s1 + $0x368] sm:$0xff]  ;;  %v461_v25 = vpack.c.bf16 %v319_v10, %v317_v9 }
  0x22   :  { %661 = vmatpush1.bf16.msra.mxu1 %v469_v35  ;;  %559 = vmatprep.subr.bf16.mxu0 %v468_v36  ;;  %v380_v23 = vld [vmem:[%s5094_s1 + $0x378] sm:$0xff]  ;;  %v28_v24 = vld [vmem:[%s5095_s2 + $0x8] sm:$0xff]  ;;  %v2741_v27 = vld [vmem:[%s5096_s0] sm:$0x3f]  ;;  %v493_v29 = vpack.c.bf16 %v383_v16, %v381_v11  ;;  %v460_v30 = vpack.c.bf16 %v316_v18, %v314_v17 }
  0x23   :  { %662 = vmatprep.subr.bf16.mxu1 %v500_v40  ;;  %v34_v26 = vld [vmem:[%s5095_s2 + $0x38] sm:$0xff]  ;;  %v2747_v31 = vrot.slane %v2741_v27, %v119_v12  ;;  %v36_v32 = vld [vmem:[%s5095_s2 + $0x48] sm:$0xff]  ;;  %v2753_v33 = vrot.slane %v2741_v27, %v127_v13  ;;  %v492_v34 = vpack.c.bf16 %v380_v23, %v378_v22  ;;  %v313_v35 = vld [vmem:[%s5094_s1 + $0x160] sm:$0xff]  ;;  %v2765_v38 = vrot.slane %v2741_v27, %v135_v19 }
  0x24   :  { %v30_v28 = vld [vmem:[%s5095_s2 + $0x18] sm:$0xff]  ;;  %v315_v36 = vld [vmem:[%s5094_s1 + $0x170] sm:$0xff]  ;;  %v377_v37 = vld [vmem:[%s5094_s1 + $0x360] sm:$0xff]  ;;  %v2768_v39 = vrot.slane %v2741_v27, %v131_v20  ;;  %v2858_v19 = vrot.slane %v2741_v27, %v123_v1 }
  0x25   :  { %560 = vmatpush2.bf16.msra.mxu0 %v467_v46  ;;  %v379_v40 = vld [vmem:[%s5094_s1 + $0x370] sm:$0xff]  ;;  %v310_v41 = vld [vmem:[%s5094_s1 + $0x148] sm:$0xff]  ;;  %v312_v42 = vld [vmem:[%s5094_s1 + $0x158] sm:$0xff]  ;;  %v144_v43 = vmul.f32 %v2747_v31, %v28_v24  ;;  %v150_v44 = vmul.f32 %v2747_v31, %v34_v26  ;;  %v146_v45 = vmul.f32 %v2753_v33, %v30_v28  ;;  %v152_v46 = vmul.f32 %v2753_v33, %v36_v32 }
  0x26   :  { %663 = vmatpush2.bf16.msra.mxu1 %v499_v48  ;;  %561 = vmatprep.subr.bf16.mxu0 %v466_v49  ;;  %v374_v47 = vld [vmem:[%s5094_s1 + $0x348] sm:$0xff]  ;;  %v376_v48 = vld [vmem:[%s5094_s1 + $0x358] sm:$0xff]  ;;  %v459_v49 = vpack.c.bf16 %v315_v36, %v313_v35  ;;  %v491_v52 = vpack.c.bf16 %v379_v40, %v377_v37  ;;  %v309_v54 = vld [vmem:[%s5094_s1 + $0x140] sm:$0xff] }
  0x27   :  { %664 = vmatprep.subr.bf16.mxu1 %v498_v53  ;;  %v228_v50 = vpack.c.bf16 %v150_v44, %v144_v43  ;;  %v230_v51 = vpack.c.bf16 %v152_v46, %v146_v45  ;;  %v458_v53 = vpack.c.bf16 %v312_v42, %v310_v41  ;;  %v311_v55 = vld [vmem:[%s5094_s1 + $0x150] sm:$0xff]  ;;  %v373_v56 = vld [vmem:[%s5094_s1 + $0x340] sm:$0xff]  ;;  %v490_v57 = vpack.c.bf16 %v376_v48, %v374_v47  ;;  %v370_v63 = vld [vmem:[%s5094_s1 + $0x328] sm:$0xff] }
  0x28   :  { %v375_v58 = vld [vmem:[%s5094_s1 + $0x350] sm:$0xff]  ;;  %v372_v0 = vld [vmem:[%s5094_s1 + $0x338] sm:$0xff]  ;;  %v305_v3 = vld [vmem:[%s5094_s1 + $0x120] sm:$0xff] }
  0x29   :  { %562 = vmatpush2.bf16.msra.mxu0 %v465_v59  ;;  %v306_v59 = vld [vmem:[%s5094_s1 + $0x128] sm:$0xff]  ;;  %575 = vmatprep.mubr.bf16.mxu0 %v228_v50  ;;  %v307_v4 = vld [vmem:[%s5094_s1 + $0x130] sm:$0xff]  ;;  %v489_v5 = vpack.c.bf16 %v375_v58, %v373_v56  ;;  %v369_v7 = vld [vmem:[%s5094_s1 + $0x320] sm:$0xff]  ;;  %v488_v9 = vpack.c.bf16 %v372_v0, %v370_v63 }
  0x2a   :  { %665 = vmatpush2.bf16.msra.mxu1 %v497_v61  ;;  %563 = vmatprep.subr.bf16.mxu0 %v464_v62  ;;  %v308_v61 = vld [vmem:[%s5094_s1 + $0x138] sm:$0xff]  ;;  %v115_v62 = vsub.s32 0, %v2678_v60  ;;  %v371_v60 = vld [vmem:[%s5094_s1 + $0x330] sm:$0xff]  ;;  %v366_v11 = vld [vmem:[%s5094_s1 + $0x308] sm:$0xff]  ;;  %v455_v20 = vpack.c.bf16 %v307_v4, %v305_v3 }
  0x2b   :  { %666 = vmatprep.subr.bf16.mxu1 %v496_v2  ;;  %678 = vmatprep.mubr.bf16.mxu1 %v230_v51  ;;  %v457_v2 = vpack.c.bf16 %v311_v55, %v309_v54  ;;  %v456_v6 = vpack.c.bf16 %v308_v61, %v306_v59  ;;  %v304_v10 = vld [vmem:[%s5094_s1 + $0x118] sm:$0xff]  ;;  %v27_v16 = vld [vmem:[%s5095_s2] sm:$0xff]  ;;  %v33_v17 = vld [vmem:[%s5095_s2 + $0x30] sm:$0xff]  ;;  %v487_v24 = vpack.c.bf16 %v371_v60, %v369_v7 }
  0x2c   :  { %v368_v12 = vld [vmem:[%s5094_s1 + $0x318] sm:$0xff]  ;;  %v2840_v13 = vrot.slane %v2741_v27, %v115_v62  ;;  %v29_v18 = vld [vmem:[%s5095_s2 + $0x10] sm:$0xff]  ;;  %v40_v22 = vld [vmem:[%s5095_s2 + $0x68] sm:$0xff] }
  0x2d   :  { %564 = vmatpush2.bf16.msra.mxu0 %v463_v8  ;;  %v302_v8 = vld [vmem:[%s5094_s1 + $0x108] sm:$0xff]  ;;  %v46_v23 = vld [vmem:[%s5095_s2 + $0x98] sm:$0xff]  ;;  %v365_v26 = vld [vmem:[%s5094_s1 + $0x300] sm:$0xff]  ;;  %v2890_v37 = vmul.f32 %v2858_v19, %v29_v18  ;;  %v2896_v41 = vmul.f32 %v2747_v31, %v40_v22 }
  0x2e   :  { %667 = vmatpush2.bf16.msra.mxu1 %v495_v14  ;;  %565 = vmatprep.subr.bf16.mxu0 %v462_v15  ;;  %v301_v14 = vld [vmem:[%s5094_s1 + $0x100] sm:$0xff]  ;;  %v303_v15 = vld [vmem:[%s5094_s1 + $0x110] sm:$0xff]  ;;  %v42_v27 = vld [vmem:[%s5095_s2 + $0x78] sm:$0xff]  ;;  %v143_v32 = vmul.f32 %v2840_v13, %v27_v16  ;;  %v2899_v42 = vmul.f32 %v2747_v31, %v46_v23 }
  0x2f   :  { %668 = vmatprep.subr.bf16.mxu1 %v494_v21  ;;  %v35_v21 = vld [vmem:[%s5095_s2 + $0x40] sm:$0xff]  ;;  %v48_v28 = vld [vmem:[%s5095_s2 + $0xa8] sm:$0xff]  ;;  %v428_v36 = vld [vmem:[%s5094_s1 + $0x4f8] sm:$0xff]  ;;  %v453_v46 = vpack.c.bf16 %v303_v15, %v301_v14  ;;  %v2911_v47 = vmul.f32 %v2753_v33, %v42_v27 }
  0x30   :  { %v426_v35 = vld [vmem:[%s5094_s1 + $0x4e8] sm:$0xff]  ;;  %v2893_v40 = vmul.f32 %v2858_v19, %v35_v21  ;;  %v39_v43 = vld [vmem:[%s5095_s2 + $0x60] sm:$0xff]  ;;  %v45_v44 = vld [vmem:[%s5095_s2 + $0x90] sm:$0xff]  ;;  %v2914_v48 = vmul.f32 %v2753_v33, %v48_v28  ;;  %v234_v63 = vpack.c.bf16 %v2899_v42, %v2896_v41 }
  0x31   :  { %566 = vmatpush2.bf16.msra.mxu0 %v461_v25  ;;  %v454_v25 = vpack.c.bf16 %v304_v10, %v302_v8  ;;  %v41_v45 = vld [vmem:[%s5095_s2 + $0x70] sm:$0xff]  ;;  %v52_v50 = vld [vmem:[%s5095_s2 + $0xc8] sm:$0xff]  ;;  %v58_v51 = vld [vmem:[%s5095_s2 + $0xf8] sm:$0xff]  ;;  %v516_v56 = vpack.c.bf16 %v428_v36, %v426_v35  ;;  %v2948_v0 = vmul.f32 %v2840_v13, %v39_v43  ;;  %v2951_v1 = vmul.f32 %v2840_v13, %v45_v44 }
  0x32   :  { %669 = vmatpush2.bf16.msra.mxu1 %v493_v29  ;;  %567 = vmatprep.subr.bf16.mxu0 %v460_v30  ;;  %v486_v29 = vpack.c.bf16 %v368_v12, %v366_v11  ;;  %v367_v30 = vld [vmem:[%s5094_s1 + $0x310] sm:$0xff]  ;;  %v60_v54 = vld [vmem:[%s5095_s2 + $0x108] sm:$0xff]  ;;  %v51_v55 = vld [vmem:[%s5095_s2 + $0xc0] sm:$0xff]  ;;  %v229_v62 = vpack.c.bf16 %v2893_v40, %v2890_v37  ;;  %v2971_v60 = vmul.f32 %v2747_v31, %v52_v50 }
  0x33   :  { %670 = vmatprep.subr.bf16.mxu1 %v492_v34  ;;  %v149_v34 = vmul.f32 %v2840_v13, %v33_v17  ;;  %v57_v58 = vld [vmem:[%s5095_s2 + $0xf0] sm:$0xff]  ;;  %v425_v59 = vld [vmem:[%s5094_s1 + $0x4e0] sm:$0xff]  ;;  %v422_v3 = vld [vmem:[%s5094_s1 + $0x4c8] sm:$0xff]  ;;  %v2983_v11 = vmul.f32 %v2747_v31, %v58_v51  ;;  %v2995_v17 = vmul.f32 %v2753_v33, %v60_v54  ;;  %v2998_v18 = vmul.f32 %v2840_v13, %v51_v55 }
  0x34   :  { %v427_v61 = vld [vmem:[%s5094_s1 + $0x4f0] sm:$0xff]  ;;  %v424_v4 = vld [vmem:[%s5094_s1 + $0x4d8] sm:$0xff]  ;;  %v59_v8 = vld [vmem:[%s5095_s2 + $0x100] sm:$0xff] }
  0x35   :  { %568 = vmatpush2.bf16.msra.mxu0 %v459_v49  ;;  %v47_v49 = vld [vmem:[%s5095_s2 + $0xa0] sm:$0xff]  ;;  %v70_v10 = vld [vmem:[%s5095_s2 + $0x158] sm:$0xff]  ;;  %v515_v14 = vpack.c.bf16 %v427_v61, %v425_v59  ;;  %v72_v16 = vld [vmem:[%s5095_s2 + $0x168] sm:$0xff]  ;;  %v514_v21 = vpack.c.bf16 %v424_v4, %v422_v3  ;;  %v240_v54 = vpack.c.bf16 %v2983_v11, %v2971_v60 }
  0x36   :  { %671 = vmatpush2.bf16.msra.mxu1 %v491_v52  ;;  %569 = vmatprep.subr.bf16.mxu0 %v458_v53  ;;  %v485_v52 = vpack.c.bf16 %v367_v30, %v365_v26  ;;  %v54_v53 = vld [vmem:[%s5095_s2 + $0xd8] sm:$0xff]  ;;  %v2968_v7 = vmul.f32 %v2858_v19, %v47_v49  ;;  %v421_v22 = vld [vmem:[%s5094_s1 + $0x4c0] sm:$0xff]  ;;  %v423_v23 = vld [vmem:[%s5094_s1 + $0x4d0] sm:$0xff]  ;;  %v3016_v26 = vmul.f32 %v2858_v19, %v59_v8 }
  0x37   :  { %672 = vmatprep.subr.bf16.mxu1 %v490_v57  ;;  %v227_v57 = vpack.c.bf16 %v149_v34, %v143_v32  ;;  %v2986_v12 = vmul.f32 %v2753_v33, %v54_v53  ;;  %v66_v15 = vld [vmem:[%s5095_s2 + $0x138] sm:$0xff]  ;;  %v3022_v28 = vmul.f32 %v2747_v31, %v70_v10  ;;  %v65_v30 = vld [vmem:[%s5095_s2 + $0x130] sm:$0xff]  ;;  %v71_v32 = vld [vmem:[%s5095_s2 + $0x160] sm:$0xff]  ;;  %v3043_v37 = vmul.f32 %v2753_v33, %v72_v16 }
  0x38   :  { %v418_v34 = vld [vmem:[%s5094_s1 + $0x4a8] sm:$0xff]  ;;  %v420_v35 = vld [vmem:[%s5094_s1 + $0x4b8] sm:$0xff]  ;;  %v3040_v36 = vmul.f32 %v2753_v33, %v66_v15  ;;  %v3048_v40 = vld [vmem:[%s5094_s1 + $0x4a0] sm:$0xff] }
  0x39   :  { %570 = vmatpush2.bf16.msra.mxu0 %v457_v2  ;;  %v53_v2 = vld [vmem:[%s5095_s2 + $0xd0] sm:$0xff]  ;;  %v3058_v42 = vld [vmem:[%s5094_s1 + $0x488] sm:$0xff]  ;;  %v3063_v43 = vld [vmem:[%s5094_s1 + $0x498] sm:$0xff]  ;;  %v242_v55 = vpack.c.bf16 %v2995_v17, %v2986_v12 }
  0x3a   :  { %673 = vmatpush2.bf16.msra.mxu1 %v489_v5  ;;  %571 = vmatprep.subr.bf16.mxu0 %v456_v6  ;;  %v236_v5 = vpack.c.bf16 %v2914_v48, %v2911_v47  ;;  %v2965_v6 = vmul.f32 %v2858_v19, %v41_v45  ;;  %v3053_v41 = vld [vmem:[%s5094_s1 + $0x4b0] sm:$0xff]  ;;  %v3068_v44 = vld [vmem:[%s5094_s1 + $0x480] sm:$0xff]  ;;  %v233_v47 = vpack.c.bf16 %v2951_v1, %v2948_v0  ;;  %v82_v49 = vld [vmem:[%s5095_s2 + $0x1b8] sm:$0xff] }
  0x3b   :  { %674 = vmatprep.subr.bf16.mxu1 %v488_v9  ;;  %v64_v9 = vld [vmem:[%s5095_s2 + $0x128] sm:$0xff]  ;;  %v3073_v45 = vld [vmem:[%s5094_s1 + $0x490] sm:$0xff]  ;;  %v513_v48 = vpack.c.bf16 %v423_v23, %v421_v22  ;;  %v78_v50 = vld [vmem:[%s5095_s2 + $0x198] sm:$0xff]  ;;  %v248_v4 = vpack.c.bf16 %v3043_v37, %v3040_v36  ;;  %v511_v10 = vpack.c.bf16 %v3053_v41, %v3048_v40  ;;  %v510_v11 = vpack.c.bf16 %v3063_v43, %v3058_v42 }
  0x3c   :  { %v3019_v27 = vmul.f32 %v2747_v31, %v64_v9  ;;  %v84_v51 = vld [vmem:[%s5095_s2 + $0x1c8] sm:$0xff]  ;;  %v235_v53 = vpack.c.bf16 %v2968_v7, %v2965_v6  ;;  %v3113_v59 = vld [vmem:[%s5094_s1 + $0x470] sm:$0xff]  ;;  %v3137_v3 = vld [vmem:[%s5094_s1 + $0x440] sm:$0xff]  ;;  %v3145_v6 = vmul.f32 %v2858_v19, %v65_v30  ;;  %v3148_v7 = vmul.f32 %v2858_v19, %v71_v32 }
  0x3d   :  { %572 = vmatpush2.bf16.msra.mxu0 %v455_v20  ;;  %v3001_v20 = vmul.f32 %v2840_v13, %v57_v58  ;;  %v3108_v58 = vld [vmem:[%s5094_s1 + $0x460] sm:$0xff]  ;;  %v3127_v1 = vld [vmem:[%s5094_s1 + $0x448] sm:$0xff]  ;;  %v3153_v60 = vld [vmem:[%s5094_s1 + $0x450] sm:$0xff]  ;;  %v509_v12 = vpack.c.bf16 %v3073_v45, %v3068_v44  ;;  %v3175_v15 = vmul.f32 %v2747_v31, %v82_v49  ;;  %v3178_v16 = vmul.f32 %v2753_v33, %v78_v50 }
  0x3e   :  { %675 = vmatpush2.bf16.msra.mxu1 %v487_v24  ;;  %573 = vmatprep.subr.bf16.mxu0 %v454_v25  ;;  %v63_v24 = vld [vmem:[%s5095_s2 + $0x120] sm:$0xff]  ;;  %v3013_v25 = vmul.f32 %v2858_v19, %v53_v2  ;;  %v3132_v2 = vld [vmem:[%s5094_s1 + $0x458] sm:$0xff]  ;;  %v3158_v8 = vld [vmem:[%s5094_s1 + $0x428] sm:$0xff]  ;;  %v3181_v17 = vmul.f32 %v2753_v33, %v84_v51  ;;  %v507_v22 = vpack.c.bf16 %v3113_v59, %v3108_v58 }
  0x3f   :  { %676 = vmatprep.subr.bf16.mxu1 %v486_v29  ;;  %v69_v29 = vld [vmem:[%s5095_s2 + $0x150] sm:$0xff]  ;;  %v239_v61 = vpack.c.bf16 %v3001_v20, %v2998_v18  ;;  %v3122_v0 = vmul.f32 %v2840_v13, %v63_v24  ;;  %v3163_v9 = vld [vmem:[%s5094_s1 + $0x438] sm:$0xff]  ;;  %v32_v30 = vld [vmem:[%s5095_s2 + $0x28] sm:$0xff] }
  0x40   :  { %v38_v32 = vld [vmem:[%s5095_s2 + $0x58] sm:$0xff]  ;;  %v37_v41 = vld [vmem:[%s5095_s2 + $0x50] sm:$0xff]  ;;  %v44_v43 = vld [vmem:[%s5095_s2 + $0x88] sm:$0xff] }
  0x41   :  { %574 = vmatpush2.bf16.msra.mxu0 %v453_v46  ;;  %v76_v46 = vld [vmem:[%s5095_s2 + $0x188] sm:$0xff]  ;;  %v3206_v40 = vmul.f32 %v2765_v38, %v38_v32  ;;  %v50_v44 = vld [vmem:[%s5095_s2 + $0xb8] sm:$0xff]  ;;  %v3221_v45 = vmul.f32 %v2768_v39, %v37_v41  ;;  %v49_v49 = vld [vmem:[%s5095_s2 + $0xb0] sm:$0xff] }
  0x42   :  { %677 = vmatpush2.bf16.msra.mxu1 %v485_v52  ;;  %749 = vmatprep.subr.bf16.mxu0 %v516_v56  ;;  %v3092_v52 = vld [vmem:[%s5094_s1 + $0x468] sm:$0xff]  ;;  %v512_v56 = vpack.c.bf16 %v420_v35, %v418_v34  ;;  %v31_v34 = vld [vmem:[%s5095_s2 + $0x20] sm:$0xff]  ;;  %v3203_v35 = vmul.f32 %v2765_v38, %v32_v30  ;;  %v74_v41 = vld [vmem:[%s5095_s2 + $0x178] sm:$0xff] }
  0x43   :  { %v3212_v42 = vmul.f32 %v2768_v39, %v31_v34  ;;  %v56_v50 = vld [vmem:[%s5095_s2 + $0xe8] sm:$0xff]  ;;  %v110_v18 = vld [vmem:[%s5095_s2 + $0x298] sm:$0xff]  ;;  %v103_v20 = vld [vmem:[%s5095_s2 + $0x260] sm:$0xff] }
  0x44   :  { %576 = vmatmul.mubr.bf16.vlgmr.msra.gmra.mxu0 %v227_v57  ;;  %v3103_v57 = vld [vmem:[%s5094_s1 + $0x478] sm:$0xff]  ;;  %v68_v34 = vld [vmem:[%s5095_s2 + $0x148] sm:$0xff]  ;;  %v401_v36 = vld [vmem:[%s5094_s1 + $0x420] sm:$0xff]  ;;  %v3401_v59 = vmul.f32 %v2765_v38, %v110_v18 }
  0x45   :  { %679 = vmatmul.mubr.bf16.vlgmr.msra.gmra.mxu1 %v229_v62  ;;  %585 = vmatprep.mubr.bf16.mxu0 %v234_v63  ;;  %v241_v62 = vpack.c.bf16 %v3016_v26, %v3013_v25  ;;  %v246_v63 = vpack.c.bf16 %v3022_v28, %v3019_v27  ;;  %v104_v23 = vld [vmem:[%s5095_s2 + $0x268] sm:$0xff]  ;;  %v5105_v28 = vpack.c.bf16 %v3132_v2, %v3127_v1  ;;  %v403_v37 = vld [vmem:[%s5094_s1 + $0x430] sm:$0xff]  ;;  %v75_v2 = vld [vmem:[%s5095_s2 + $0x180] sm:$0xff] }
  0x46   :  { %688 = vmatprep.mubr.bf16.mxu1 %v236_v5  ;;  %750 = vmatpush1.bf16.msra.mxu0 %v515_v14  ;;  %v3142_v5 = vmul.f32 %v2840_v13, %v69_v29  ;;  %v3172_v14 = vmul.f32 %v2747_v31, %v76_v46  ;;  %v3224_v46 = vmul.f32 %v2765_v38, %v44_v43  ;;  %v67_v43 = vld [vmem:[%s5095_s2 + $0x140] sm:$0xff]  ;;  %v98_v29 = vld [vmem:[%s5095_s2 + $0x238] sm:$0xff] }
  0x47   :  { %751 = vmatprep.subr.bf16.mxu0 %v514_v21  ;;  %v508_v21 = vpack.c.bf16 %v3103_v57, %v3092_v52  ;;  %v61_v57 = vld [vmem:[%s5095_s2 + $0x110] sm:$0xff]  ;;  %v3348_v24 = vmul.f32 %v2765_v38, %v98_v29  ;;  %v3387_v27 = vmul.f32 %v2765_v38, %v104_v23  ;;  %v83_v23 = vld [vmem:[%s5095_s2 + $0x1c0] sm:$0xff]  ;;  %v90_v18 = vld [vmem:[%s5095_s2 + $0x1f8] sm:$0xff] }
  0x48   :  { %v245_v1 = vpack.c.bf16 %v3142_v5, %v3122_v0  ;;  %v81_v0 = vld [vmem:[%s5095_s2 + $0x1b0] sm:$0xff] }
  0x49   :  { %v77_v5 = vld [vmem:[%s5095_s2 + $0x190] sm:$0xff] }
  0x4a   :  { %752 = vmatpush1.bf16.msra.mxu0 %v513_v48  ;;  %v43_v48 = vld [vmem:[%s5095_s2 + $0x80] sm:$0xff] }
  0x4b   :  { %753 = vmatprep.subr.bf16.mxu0 %v512_v56  ;;  %v3241_v52 = vmul.f32 %v2768_v39, %v43_v48  ;;  %v55_v56 = vld [vmem:[%s5095_s2 + $0xe0] sm:$0xff]  ;;  %v3280_v48 = vmul.f32 %v2768_v39, %v61_v57  ;;  %v92_v57 = vld [vmem:[%s5095_s2 + $0x208] sm:$0xff] }
  0x4c   :  { %586 = vmatmul.mubr.bf16.gmra.mxu0 %v233_v47  ;;  %v3227_v47 = vmul.f32 %v2765_v38, %v50_v44  ;;  %v3266_v32 = vmul.f32 %v2768_v39, %v55_v56  ;;  %v80_v56 = vld [vmem:[%s5095_s2 + $0x1a8] sm:$0xff]  ;;  %v86_v44 = vld [vmem:[%s5095_s2 + $0x1d8] sm:$0xff] }
  0x4d   :  { %689 = vmatmul.mubr.bf16.gmra.mxu1 %v235_v53  ;;  %595 = vmatprep.mubr.bf16.mxu0 %v240_v54  ;;  %v3244_v53 = vmul.f32 %v2768_v39, %v49_v49  ;;  %v62_v54 = vld [vmem:[%s5095_s2 + $0x118] sm:$0xff]  ;;  %v3283_v49 = vmul.f32 %v2765_v38, %v68_v34  ;;  %v3300_v34 = vmul.f32 %v2768_v39, %v67_v43  ;;  %v97_v43 = vld [vmem:[%s5095_s2 + $0x230] sm:$0xff] }
  0x4e   :  { %698 = vmatprep.mubr.bf16.mxu1 %v242_v55  ;;  %754 = vmatpush1.bf16.msra.mxu0 %v511_v10  ;;  %v3250_v55 = vmul.f32 %v2765_v38, %v56_v50  ;;  %v3263_v30 = vmul.f32 %v2765_v38, %v62_v54  ;;  %v3286_v50 = vmul.f32 %v2765_v38, %v74_v41  ;;  %v73_v54 = vld [vmem:[%s5095_s2 + $0x170] sm:$0xff]  ;;  %v79_v10 = vld [vmem:[%s5095_s2 + $0x1a0] sm:$0xff] }
  0x4f   :  { %755 = vmatprep.subr.bf16.mxu0 %v510_v11  ;;  %v3303_v41 = vmul.f32 %v2768_v39, %v73_v54  ;;  %v3306_v11 = vmul.f32 %v2765_v38, %v80_v56  ;;  %v3322_v56 = vmul.f32 %v2765_v38, %v86_v44  ;;  %v3325_v51 = vmul.f32 %v2768_v39, %v79_v10 }
  0x50   :  { %v3345_v54 = vmul.f32 %v2765_v38, %v92_v57  ;;  %v3371_v57 = vmul.f32 %v2768_v39, %v97_v43  ;;  %v400_v38 = vld [vmem:[%s5094_s1 + $0x418] sm:$0xff]  ;;  %v268_v43 = vpack.c.bf16 %v3401_v59, %v3387_v27 }
  0x51   :  { %v249_v10 = vpack.c.bf16 %v3303_v41, %v3300_v34 }
  0x52   :  { %756 = vmatpush1.bf16.msra.mxu0 %v509_v12  ;;  %v85_v12 = vld [vmem:[%s5095_s2 + $0x1d0] sm:$0xff]  ;;  %v262_v26 = vpack.c.bf16 %v3348_v24, %v3345_v54 }
  0x53   :  { %757 = vmatprep.subr.bf16.mxu0 %v508_v21  ;;  %v91_v21 = vld [vmem:[%s5095_s2 + $0x200] sm:$0xff]  ;;  %v3342_v44 = vmul.f32 %v2768_v39, %v85_v12  ;;  %v109_v12 = vld [vmem:[%s5095_s2 + $0x290] sm:$0xff] }
  0x54   :  { %596 = vmatmul.mubr.bf16.gmra.mxu0 %v239_v61  ;;  %v256_v61 = vpack.c.bf16 %v3322_v56, %v3306_v11  ;;  %v3368_v29 = vmul.f32 %v2768_v39, %v91_v21  ;;  %v94_v21 = vld [vmem:[%s5095_s2 + $0x218] sm:$0xff] }
  0x55   :  { %699 = vmatmul.mubr.bf16.gmra.mxu1 %v241_v62  ;;  %605 = vmatprep.mubr.bf16.mxu0 %v246_v63  ;;  %v255_v25 = vpack.c.bf16 %v3342_v44, %v3325_v51  ;;  %v3404_v62 = vmul.f32 %v2768_v39, %v103_v20  ;;  %v3407_v63 = vmul.f32 %v2768_v39, %v109_v12  ;;  %v399_v12 = vld [vmem:[%s5094_s1 + $0x410] sm:$0xff] }
  0x56   :  { %708 = vmatprep.mubr.bf16.mxu1 %v248_v4  ;;  %758 = vmatpush1.bf16.msra.mxu0 %v507_v22  ;;  %v261_v58 = vpack.c.bf16 %v3371_v57, %v3368_v29  ;;  %v398_v4 = vld [vmem:[%s5094_s1 + $0x408] sm:$0xff]  ;;  %v247_v22 = vpack.c.bf16 %v3148_v7, %v3145_v6  ;;  %v252_v39 = vpack.c.bf16 %v3175_v15, %v3172_v14 }
  0x57   :  { %759 = vmatprep.subr.bf16.mxu0 %v5105_v28  ;;  %v267_v6 = vpack.c.bf16 %v3407_v63, %v3404_v62  ;;  %v254_v7 = vpack.c.bf16 %v3181_v17, %v3178_v16  ;;  %v5106_v14 = vpack.c.bf16 %v3153_v60, %v3137_v3  ;;  %v88_v15 = vld [vmem:[%s5095_s2 + $0x1e8] sm:$0xff]  ;;  %v503_v20 = vpack.c.bf16 %v403_v37, %v401_v36  ;;  %v397_v17 = vld [vmem:[%s5094_s1 + $0x400] sm:$0xff] }
  0x58   :  { %v96_v16 = vld [vmem:[%s5095_s2 + $0x228] sm:$0xff]  ;;  %v5107_v3 = vpack.c.bf16 %v3163_v9, %v3158_v8  ;;  %v502_v60 = vpack.c.bf16 %v400_v38, %v398_v4  ;;  %v191_v28 = vmul.f32 %v2840_v13, %v75_v2  ;;  %v197_v36 = vmul.f32 %v2840_v13, %v81_v0  ;;  %v436_v9 = vld [vmem:[%s5094_s1 + $0x538] sm:$0xff] }
  0x59   :  { %v193_v37 = vmul.f32 %v2858_v19, %v77_v5  ;;  %v434_v8 = vld [vmem:[%s5094_s1 + $0x528] sm:$0xff]  ;;  %v199_v4 = vmul.f32 %v2858_v19, %v83_v23  ;;  %v210_v2 = vmul.f32 %v2747_v31, %v94_v21  ;;  %v206_v38 = vmul.f32 %v2753_v33, %v90_v18  ;;  %v432_v21 = vld [vmem:[%s5094_s1 + $0x518] sm:$0xff] }
  0x5a   :  { %760 = vmatpush1.bf16.msra.mxu0 %v5106_v14  ;;  %v212_v0 = vmul.f32 %v2753_v33, %v96_v16  ;;  %v501_v5 = vpack.c.bf16 %v399_v12, %v397_v17  ;;  %v520_v14 = vpack.c.bf16 %v436_v9, %v434_v8  ;;  %v251_v23 = vpack.c.bf16 %v197_v36, %v191_v28  ;;  %v93_v16 = vld [vmem:[%s5095_s2 + $0x210] sm:$0xff]  ;;  %v100_v12 = vld [vmem:[%s5095_s2 + $0x248] sm:$0xff]  ;;  %v106_v28 = vld [vmem:[%s5095_s2 + $0x278] sm:$0xff] }
  0x5b   :  { %761 = vmatprep.subr.bf16.mxu0 %v5107_v3  ;;  %v253_v18 = vpack.c.bf16 %v199_v4, %v193_v37  ;;  %v89_v3 = vld [vmem:[%s5095_s2 + $0x1f0] sm:$0xff]  ;;  %v102_v36 = vld [vmem:[%s5095_s2 + $0x258] sm:$0xff]  ;;  %v108_v8 = vld [vmem:[%s5095_s2 + $0x288] sm:$0xff] }
  0x5c   :  { %606 = vmatmul.mubr.bf16.gmra.mxu0 %v245_v1  ;;  %v204_v1 = vmul.f32 %v2747_v31, %v88_v15  ;;  %v430_v15 = vld [vmem:[%s5094_s1 + $0x508] sm:$0xff]  ;;  %v260_v17 = vpack.c.bf16 %v212_v0, %v206_v38  ;;  %v429_v4 = vld [vmem:[%s5094_s1 + $0x500] sm:$0xff]  ;;  %v209_v38 = vmul.f32 %v2840_v13, %v93_v16  ;;  %v205_v0 = vmul.f32 %v2858_v19, %v89_v3  ;;  %v101_v3 = vld [vmem:[%s5095_s2 + $0x250] sm:$0xff] }
  0x5d   :  { %709 = vmatmul.mubr.bf16.gmra.mxu1 %v247_v22  ;;  %615 = vmatprep.mubr.bf16.mxu0 %v252_v39  ;;  %v433_v22 = vld [vmem:[%s5094_s1 + $0x520] sm:$0xff]  ;;  %v435_v39 = vld [vmem:[%s5094_s1 + $0x530] sm:$0xff]  ;;  %v518_v9 = vpack.c.bf16 %v432_v21, %v430_v15  ;;  %v224_v15 = vmul.f32 %v2753_v33, %v108_v8  ;;  %v5108_v8 = vpack.c.bf16 %v3206_v40, %v3203_v35 }
  0x5e   :  { %718 = vmatprep.mubr.bf16.mxu1 %v254_v7  ;;  %762 = vmatpush1.bf16.msra.mxu0 %v503_v20  ;;  %v87_v7 = vld [vmem:[%s5095_s2 + $0x1e0] sm:$0xff]  ;;  %v258_v20 = vpack.c.bf16 %v210_v2, %v204_v1  ;;  %v519_v37 = vpack.c.bf16 %v435_v39, %v433_v22  ;;  %v431_v1 = vld [vmem:[%s5094_s1 + $0x510] sm:$0xff]  ;;  %v222_v22 = vmul.f32 %v2747_v31, %v106_v28 }
  0x5f   :  { %763 = vmatprep.subr.bf16.mxu0 %v502_v60  ;;  %v95_v60 = vld [vmem:[%s5095_s2 + $0x220] sm:$0xff]  ;;  %v203_v2 = vmul.f32 %v2840_v13, %v87_v7  ;;  %v218_v39 = vmul.f32 %v2753_v33, %v102_v36  ;;  %v5113_v35 = vpack.c.bf16 %v3280_v48, %v3266_v32  ;;  %v5114_v40 = vpack.c.bf16 %v3286_v50, %v3283_v49 }
  0x60   :  { %v107_v33 = vld [vmem:[%s5095_s2 + $0x280] sm:$0xff] }
  0x61   :  { %v257_v7 = vpack.c.bf16 %v209_v38, %v203_v2  ;;  %v223_v28 = vmul.f32 %v2858_v19, %v107_v33 }
  0x62   :  { %764 = vmatpush1.bf16.msra.mxu0 %v501_v5  ;;  %v211_v5 = vmul.f32 %v2858_v19, %v95_v60 }
  0x63   :  { %777 = vmatprep.subr.bf16.mxu0 %v520_v14  ;;  %v216_v14 = vmul.f32 %v2747_v31, %v100_v12  ;;  %v266_v31 = vpack.c.bf16 %v224_v15, %v218_v39  ;;  %v217_v12 = vmul.f32 %v2858_v19, %v101_v3  ;;  %v5111_v19 = vpack.c.bf16 %v3244_v53, %v3241_v52 }
  0x64   :  { %616 = vmatmul.mubr.bf16.gmra.mxu0 %v251_v23  ;;  %v517_v23 = vpack.c.bf16 %v431_v1, %v429_v4  ;;  %v259_v21 = vpack.c.bf16 %v211_v5, %v205_v0  ;;  %v5112_v4 = vpack.c.bf16 %v3263_v30, %v3250_v55 }
  0x65   :  { %719 = vmatmul.mubr.bf16.gmra.mxu1 %v253_v18  ;;  %625 = vmatprep.mubr.bf16.mxu0 %v258_v20  ;;  %v264_v16 = vpack.c.bf16 %v222_v22, %v216_v14  ;;  %v99_v18 = vld [vmem:[%s5095_s2 + $0x240] sm:$0xff]  ;;  %v105_v20 = vld [vmem:[%s5095_s2 + $0x270] sm:$0xff] }
  0x66   :  { %728 = vmatprep.mubr.bf16.mxu1 %v260_v17  ;;  %778 = vmatpush2.bf16.msra.mxu0 %v519_v37  ;;  %v215_v60 = vmul.f32 %v2840_v13, %v99_v18  ;;  %v221_v17 = vmul.f32 %v2840_v13, %v105_v20  ;;  %v265_v37 = vpack.c.bf16 %v223_v28, %v217_v12 }
  0x67   :  { %779 = vmatprep.subr.bf16.mxu0 %v518_v9  ;;  %v5109_v9 = vpack.c.bf16 %v3221_v45, %v3212_v42  ;;  %v5110_v13 = vpack.c.bf16 %v3227_v47, %v3224_v46 }
  0x68   :  { %v263_v36 = vpack.c.bf16 %v221_v17, %v215_v60 }
  0x6a   :  { %780 = vmatpush2.bf16.msra.mxu0 %v517_v23 }
  0x6c   :  { %626 = vmatmul.mubr.bf16.gmra.mxu0 %v257_v7 }
  0x6d   :  { %729 = vmatmul.mubr.bf16.gmra.mxu1 %v259_v21  ;;  %635 = vmatprep.mubr.bf16.mxu0 %v264_v16 }
  0x6e   :  { %738 = vmatprep.mubr.bf16.mxu1 %v266_v31 }
  0x74   :  { %636 = vmatmul.mubr.bf16.gmra.mxu0 %v263_v36 }
  0x75   :  { %739 = vmatmul.mubr.bf16.gmra.mxu1 %v265_v37  ;;  %2291 = vmatprep.mubr.msk.bf16.mxu0 %vm521_vm0, %v5108_v8 }
  0x7c   :  { %782 = vmatmul.mubr.bf16.vlgmr.msra.gmra.mxu0 %v5109_v9 }
  0x7d   :  { %2292 = vmatprep.mubr.msk.bf16.mxu0 %vm521_vm0, %v5110_v13 }
  0x84   :  { %792 = vmatmul.mubr.bf16.gmra.mxu0 %v5111_v19 }
  0x85   :  { %2293 = vmatprep.mubr.msk.bf16.mxu0 %vm521_vm0, %v5112_v4 }
  0x8c   :  { %802 = vmatmul.mubr.bf16.gmra.mxu0 %v5113_v35 }
  0x8d   :  { %2294 = vmatprep.mubr.msk.bf16.mxu0 %vm521_vm0, %v5114_v40 }
  0x94   :  { %812 = vmatmul.mubr.bf16.gmra.mxu0 %v249_v10 }
  0x95   :  { %2295 = vmatprep.mubr.msk.bf16.mxu0 %vm521_vm0, %v256_v61 }
  0x9c   :  { %822 = vmatmul.mubr.bf16.gmra.mxu0 %v255_v25 }
  0x9d   :  { %2296 = vmatprep.mubr.msk.bf16.mxu0 %vm521_vm0, %v262_v26 }
  0xa4   :  { %832 = vmatmul.mubr.bf16.gmra.mxu0 %v261_v58 }
  0xa5   :  { %2297 = vmatprep.mubr.msk.bf16.mxu0 %vm521_vm0, %v268_v43 }
  0xac   :  { %842 = vmatmul.mubr.bf16.gmra.mxu0 %v267_v6 }
 0x104   :  { %v577_v42 = vpop.f32.mrf.mxu0 }
 0x105   :  { %v680_v45 = vpop.f32.mrf.mxu1 }
 0x106   :  { %v681_v46 = vadd.f32 %v680_v45, %v577_v42  ;;  %v579_v47 = vpop.f32.mrf.mxu0 }
 0x107   :  { %v682_v51 = vpop.f32.mrf.mxu1 }
 0x108   :  { %v683_v52 = vadd.f32 %v682_v51, %v579_v47  ;;  %v581_v24 = vpop.f32.mrf.mxu0 }
 0x109   :  { %v684_v53 = vpop.f32.mrf.mxu1 }
 0x10a   :  { %v685_v55 = vadd.f32 %v684_v53, %v581_v24  ;;  %v3585_v11 = vpop.f32.mrf.mxu0 }
 0x10b   :  { %5115 = vst [vmem:[#allocation2_spill] sm:$0xff] %v3585_v11  ;;  %v3589_v32 = vpop.f32.mrf.mxu1 }
 0x10c   :  { %v3587_v30 = vpop.f32.mrf.mxu0  ;;  %5116 = vst [vmem:[#allocation3_spill] sm:$0xff] %v3589_v32 }
 0x10d   :  { %v3595_v50 = vpop.f32.mrf.mxu1 }
 0x10e   :  { %v3591_v48 = vpop.f32.mrf.mxu0 }
 0x10f   :  { %v3601_v54 = vpop.f32.mrf.mxu1 }
 0x110   :  { %v3593_v49 = vpop.f32.mrf.mxu0 }
 0x111   :  { %v3607_v44 = vpop.f32.mrf.mxu1 }
 0x112   :  { %v3597_v34 = vpop.f32.mrf.mxu0 }
 0x113   :  { %v3611_v57 = vpop.f32.mrf.mxu1 }
 0x114   :  { %v3599_v41 = vpop.f32.mrf.mxu0 }
 0x115   :  { %v3613_v27 = vpop.f32.mrf.mxu1 }
 0x116   :  { %v3603_v56 = vpop.f32.mrf.mxu0 }
 0x117   :  { %v3615_v62 = vpop.f32.mrf.mxu1 }
 0x118   :  { %v3605_v10 = vpop.f32.mrf.mxu0 }
 0x119   :  { %v3619_v6 = vpop.f32.mrf.mxu1 }
 0x11a   :  { %v3609_v61 = vpop.f32.mrf.mxu0 }
 0x11b   :  { %v3625_v38 = vpop.f32.mrf.mxu1 }
 0x11c   :  { %v607_v29 = vpop.f32.mrf.mxu0 }
 0x11d   :  { %v710_v14 = vpop.f32.mrf.mxu1 }
 0x11e   :  { %v609_v25 = vpop.f32.mrf.mxu0 }
 0x11f   :  { %v712_v15 = vpop.f32.mrf.mxu1 }
 0x120   :  { %v611_v26 = vpop.f32.mrf.mxu0  ;;  %v713_v51 = vadd.f32 %v712_v15, %v609_v25 }
 0x121   :  { %v714_v21 = vpop.f32.mrf.mxu1 }
 0x122   :  { %v613_v58 = vpop.f32.mrf.mxu0 }
 0x123   :  { %v716_v31 = vpop.f32.mrf.mxu1 }
 0x124   :  { %v617_v59 = vpop.f32.mrf.mxu0 }
 0x125   :  { %v720_v12 = vpop.f32.mrf.mxu1 }
 0x126   :  { %v619_v63 = vpop.f32.mrf.mxu0 }
 0x127   :  { %v722_v37 = vpop.f32.mrf.mxu1 }
 0x128   :  { %v3617_v43 = vpop.f32.mrf.mxu0 }
 0x129   :  { %v724_v13 = vpop.f32.mrf.mxu1 }
 0x12a   :  { %v3621_v1 = vpop.f32.mrf.mxu0 }
 0x12b   :  { %v726_v35 = vpop.f32.mrf.mxu1 }
 0x12c   :  { %v3623_v2 = vpop.f32.mrf.mxu0 }
 0x12d   :  { %v730_v45 = vpop.f32.mrf.mxu1 }
 0x12e   :  { %v3627_v0 = vpop.f32.mrf.mxu0 }
 0x12f   :  { %v732_v24 = vpop.f32.mrf.mxu1 }
 0x130   :  { %v3629_v5 = vpop.f32.mrf.mxu0 }
 0x132   :  { %v3631_v22 = vpop.f32.mrf.mxu0 }
 0x134   :  { %v3633_v39 = vpop.f32.mrf.mxu0 }
 0x136   :  { %v3635_v23 = vpop.f32.mrf.mxu0 }
 0x138   :  { %v3637_v7 = vpop.f32.mrf.mxu0 }
 0x13a   :  { %v3639_v16 = vpop.f32.mrf.mxu0 }
 0x13c   :  { %v783_v18 = vpop.f32.mrf.mxu0 }
 0x13d   :  { %v3641_v20 = vadd.f32 %v783_v18, %v681_v46 }
 0x13e   :  { %v785_v3 = vpop.f32.mrf.mxu0 }
 0x13f   :  { %5117 = vst [vmem:[#allocation4_spill] sm:$0xff] %v3641_v20  ;;  %v3643_v33 = vadd.f32 %v785_v3, %v683_v52  ;;  %v711_v52 = vadd.f32 %v710_v14, %v607_v29  ;;  %v715_v20 = vadd.f32 %v714_v21, %v611_v26  ;;  %v723_v14 = vadd.f32 %v722_v37, %v619_v63 }
 0x140   :  { %v787_v60 = vpop.f32.mrf.mxu0 }
 0x141   :  { %5118 = vst [vmem:[#allocation5_spill] sm:$0xff] %v3643_v33  ;;  %v3645_v17 = vadd.f32 %v787_v60, %v685_v55  ;;  %v717_v60 = vadd.f32 %v716_v31, %v613_v58  ;;  %v734_v33 = vpop.f32.mrf.mxu1 }
 0x142   :  { %v3647_v28 = vpop.f32.mrf.mxu0 }
 0x143   :  { %5119 = vst [vmem:[#allocation6_spill] sm:$0xff] %v3645_v17  ;;  %5120 = vst [vmem:[#allocation7_spill] sm:$0xff] %v3647_v28  ;;  %v736_v58 = vpop.f32.mrf.mxu1 }
 0x144   :  { %v3649_v36 = vpop.f32.mrf.mxu0 }
 0x146   :  { %v3651_v8 = vpop.f32.mrf.mxu0 }
 0x148   :  { %v3653_v9 = vpop.f32.mrf.mxu0 }
 0x14a   :  { %v3655_v19 = vpop.f32.mrf.mxu0 }
 0x14c   :  { %v3657_v4 = vpop.f32.mrf.mxu0 }
 0x14e   :  { %v3659_v40 = vpop.f32.mrf.mxu0 }
 0x150   :  { %v3661_v42 = vpop.f32.mrf.mxu0 }
 0x152   :  { %v3663_v46 = vpop.f32.mrf.mxu0 }
 0x154   :  { %v813_v47 = vpop.f32.mrf.mxu0 }
 0x155   :  { %v3667_v18 = vadd.f32 %v813_v47, %v711_v52  ;;  %v721_v47 = vadd.f32 %v720_v12, %v617_v59  ;;  %v725_v59 = vadd.f32 %v724_v13, %v3617_v43  ;;  %v740_v12 = vpop.f32.mrf.mxu1 }
 0x156   :  { %v815_v53 = vpop.f32.mrf.mxu0 }
 0x157   :  { %v3665_v55 = vadd.f32 %v815_v53, %v713_v51 }
 0x158   :  { %v817_v3 = vpop.f32.mrf.mxu0 }
 0x159   :  { %v877_v17 = vsel %vm852_vm1, %v3665_v55, 0.0  ;;  %v3674_v29 = vadd.f32 %v817_v3, %v715_v20  ;;  %v727_v20 = vadd.f32 %v726_v35, %v3621_v1  ;;  %v733_v35 = vadd.f32 %v732_v24, %v3627_v0 }
 0x15a   :  { %v819_v28 = vpop.f32.mrf.mxu0  ;;  %v878_v32 = vadd.f32 %v877_v17, %v3667_v18 }
 0x15b   :  { %v3672_v11 = vadd.f32 %v819_v28, %v717_v60 }
 0x15c   :  { %v823_v25 = vpop.f32.mrf.mxu0  ;;  %879 = vadd.xlane.f32.xlu0 %v878_v32 }
 0x15d   :  { %v881_v15 = vsel %vm852_vm1, %v3672_v11, 0.0  ;;  %v3681_v21 = vadd.f32 %v823_v25, %v721_v47  ;;  %v731_v25 = vadd.f32 %v730_v45, %v3623_v2 }
 0x15e   :  { %v825_v31 = vpop.f32.mrf.mxu0  ;;  %v882_v51 = vadd.f32 %v881_v15, %v3674_v29 }
 0x15f   :  { %v3679_v26 = vadd.f32 %v825_v31, %v723_v14  ;;  %v939_v1 = vmul.f32 %v3681_v21, %v3681_v21  ;;  %v742_v14 = vpop.f32.mrf.mxu1 }
 0x160   :  { %v827_v17 = vpop.f32.mrf.mxu0  ;;  %883 = vadd.xlane.f32.xlu1 %v882_v51 }
 0x161   :  { %v885_v32 = vsel %vm852_vm1, %v3679_v26, 0.0  ;;  %v940_v63 = vmul.f32 %v3679_v26, %v3679_v26  ;;  %v3693_v3 = vadd.f32 %v827_v17, %v725_v59  ;;  %v744_v59 = vpop.f32.mrf.mxu1 }
 0x162   :  { %v829_v28 = vpop.f32.mrf.mxu0  ;;  %v886_v37 = vadd.f32 %v885_v32, %v3681_v21  ;;  %v737_v32 = vadd.f32 %v736_v58, %v3631_v22 }
 0x163   :  { %v3690_v52 = vadd.f32 %v829_v28, %v727_v20  ;;  %v983_v53 = vsel %vm852_vm1, %v940_v63, 0.0  ;;  %v941_v24 = vmul.f32 %v3693_v3, %v3693_v3  ;;  %v735_v63 = vadd.f32 %v734_v33, %v3629_v5 }
 0x164   :  { %v833_v60 = vpop.f32.mrf.mxu0  ;;  %887 = vadd.xlane.f32.xlu0 %v886_v37  ;;  %v984_v31 = vadd.f32 %v983_v53, %v939_v1 }
 0x165   :  { %v889_v43 = vsel %vm852_vm1, %v3690_v52, 0.0  ;;  %v942_v13 = vmul.f32 %v3690_v52, %v3690_v52  ;;  %v3707_v20 = vadd.f32 %v833_v60, %v731_v25  ;;  %v746_v25 = vpop.f32.mrf.mxu1 }
 0x166   :  { %v835_v15 = vpop.f32.mrf.mxu0  ;;  %v890_v47 = vadd.f32 %v889_v43, %v3693_v3  ;;  %v743_v43 = vadd.f32 %v742_v14, %v3635_v23 }
 0x167   :  { %v3704_v51 = vadd.f32 %v835_v15, %v733_v35  ;;  %v987_v17 = vsel %vm852_vm1, %v942_v13, 0.0  ;;  %v943_v58 = vmul.f32 %v3707_v20, %v3707_v20  ;;  %v741_v13 = vadd.f32 %v740_v12, %v3633_v39 }
 0x168   :  { %v837_v0 = vpop.f32.mrf.mxu0  ;;  %891 = vadd.xlane.f32.xlu1 %v890_v47  ;;  %985 = vadd.xlane.f32.xlu0 %v984_v31  ;;  %v988_v37 = vadd.f32 %v987_v17, %v941_v24 }
 0x169   :  { %v893_v2 = vsel %vm852_vm1, %v3704_v51, 0.0  ;;  %v944_v45 = vmul.f32 %v3704_v51, %v3704_v51  ;;  %v3721_v35 = vadd.f32 %v837_v0, %v735_v63 }
 0x16a   :  { %v839_v28 = vpop.f32.mrf.mxu0  ;;  %v894_v53 = vadd.f32 %v893_v2, %v3707_v20  ;;  %v745_v2 = vadd.f32 %v744_v59, %v3637_v7  ;;  %v703_v59 = vadd.f32 %v3615_v62, %v3603_v56  ;;  %v937_v56 = vmul.f32 %v3674_v29, %v3674_v29 }
 0x16b   :  { %v3718_v60 = vadd.f32 %v839_v28, %v737_v32  ;;  %v991_v1 = vsel %vm852_vm1, %v944_v45, 0.0  ;;  %v945_v14 = vmul.f32 %v3721_v35, %v3721_v35  ;;  %v747_v32 = vadd.f32 %v746_v25, %v3639_v16 }
 0x16c   :  { %v843_v22 = vpop.f32.mrf.mxu0  ;;  %989 = vadd.xlane.f32.xlu1 %v988_v37  ;;  %895 = vadd.xlane.f32.xlu0 %v894_v53  ;;  %v992_v31 = vadd.f32 %v991_v1, %v943_v58  ;;  %v938_v1 = vmul.f32 %v3672_v11, %v3672_v11  ;;  %v936_v16 = vmul.f32 %v3665_v55, %v3665_v55 }
 0x16d   :  { %v897_v5 = vsel %vm852_vm1, %v3718_v60, 0.0  ;;  %v946_v33 = vmul.f32 %v3718_v60, %v3718_v60  ;;  %v3735_v24 = vadd.f32 %v843_v22, %v741_v13  ;;  %v707_v58 = vadd.f32 %v3625_v38, %v3609_v61 }
 0x16e   :  { %v845_v15 = vpop.f32.mrf.mxu0  ;;  %v898_v47 = vadd.f32 %v897_v5, %v3721_v35  ;;  %v3765_v13 = vadd.f32 %v3659_v40, %v703_v59  ;;  %v935_v61 = vmul.f32 %v3667_v18, %v3667_v18  ;;  %v701_v62 = vadd.f32 %v3613_v27, %v3599_v41 }
 0x16f   :  { %v3732_v17 = vadd.f32 %v845_v15, %v743_v43  ;;  %v995_v0 = vsel %vm852_vm1, %v946_v33, 0.0  ;;  %v947_v7 = vmul.f32 %v3735_v24, %v3735_v24  ;;  %v3768_v25 = vadd.f32 %v3663_v46, %v707_v58 }
 0x170   :  { %v847_v23 = vpop.f32.mrf.mxu0  ;;  %899 = vadd.xlane.f32.xlu1 %v898_v47  ;;  %993 = vadd.xlane.f32.xlu0 %v992_v31  ;;  %v996_v63 = vadd.f32 %v995_v0, %v945_v14  ;;  %v979_v15 = vsel %vm852_vm1, %v938_v1, 0.0  ;;  %v975_v47 = vsel %vm852_vm1, %v936_v16, 0.0  ;;  %v705_v38 = vadd.f32 %v3619_v6, %v3605_v10 }
 0x171   :  { %v901_v39 = vsel %vm852_vm1, %v3732_v17, 0.0  ;;  %v948_v12 = vmul.f32 %v3732_v17, %v3732_v17  ;;  %v3753_v22 = vadd.f32 %v847_v23, %v745_v2  ;;  %v980_v40 = vadd.f32 %v979_v15, %v937_v56 }
 0x172   :  { %v849_v45 = vpop.f32.mrf.mxu0  ;;  %v902_v28 = vadd.f32 %v901_v39, %v3735_v24  ;;  %v976_v46 = vadd.f32 %v975_v47, %v935_v61  ;;  %v873_v31 = vsel %vm852_vm1, %v3768_v25, 0.0  ;;  %v869_v0 = vsel %vm852_vm1, %v3765_v13, 0.0  ;;  %v5123_v47 = vld [vmem:[#allocation7_spill] sm:$0xff] }
 0x173   :  { %v3746_v37 = vadd.f32 %v849_v45, %v747_v32  ;;  %v999_v53 = vsel %vm852_vm1, %v948_v12, 0.0  ;;  %v932_v14 = vmul.f32 %v3765_v13, %v3765_v13  ;;  %v3789_v32 = vadd.f32 %v3657_v4, %v701_v62  ;;  %v5124_v62 = vld [vmem:[#allocation5_spill] sm:$0xff] }
 0x174   :  { %997 = vadd.xlane.f32.xlu1 %v996_v63  ;;  %903 = vadd.xlane.f32.xlu0 %v902_v28  ;;  %v1000_v5 = vadd.f32 %v999_v53, %v947_v7  ;;  %v3792_v41 = vadd.f32 %v3661_v42, %v705_v38  ;;  %v693_v10 = vadd.f32 %v3601_v54, %v3591_v48 }
 0x175   :  { %v905_v43 = vsel %vm852_vm1, %v3746_v37, 0.0  ;;  %v950_v23 = vmul.f32 %v3746_v37, %v3746_v37  ;;  %v870_v6 = vadd.f32 %v869_v0, %v3789_v32  ;;  %v967_v4 = vsel %vm852_vm1, %v932_v14, 0.0 }
 0x176   :  { %v906_v33 = vadd.f32 %v905_v43, %v3753_v22  ;;  %v874_v27 = vadd.f32 %v873_v31, %v3792_v41  ;;  %v3799_v39 = vadd.f32 %v3651_v8, %v693_v10  ;;  %v934_v42 = vmul.f32 %v3768_v25, %v3768_v25  ;;  %v5125_v31 = vld [vmem:[#allocation4_spill] sm:$0xff] }
 0x177   :  { %v1003_v12 = vsel %vm852_vm1, %v950_v23, 0.0  ;;  %v949_v2 = vmul.f32 %v3753_v22, %v3753_v22  ;;  %v931_v48 = vmul.f32 %v3789_v32, %v3789_v32  ;;  %v697_v54 = vadd.f32 %v3611_v57, %v3597_v34 }
 0x178   :  { %1001 = vadd.xlane.f32.xlu1 %v1000_v5  ;;  %907 = vadd.xlane.f32.xlu0 %v906_v33  ;;  %v691_v8 = vadd.f32 %v3595_v50, %v3587_v30  ;;  %v971_v53 = vsel %vm852_vm1, %v934_v42, 0.0  ;;  %v861_v1 = vsel %vm852_vm1, %v3799_v39, 0.0  ;;  %v928_v16 = vmul.f32 %v3799_v39, %v3799_v39 }
 0x179   :  { %v1004_v45 = vadd.f32 %v1003_v12, %v949_v2  ;;  %v968_v63 = vadd.f32 %v967_v4, %v931_v48  ;;  %v3814_v28 = vadd.f32 %v3655_v19, %v697_v54  ;;  %v933_v30 = vmul.f32 %v3792_v41, %v3792_v41 }
 0x17a   :  { %v3822_v7 = vadd.f32 %v3649_v36, %v691_v8  ;;  %v695_v50 = vadd.f32 %v3607_v44, %v3593_v49  ;;  %v959_v59 = vsel %vm852_vm1, %v928_v16, 0.0  ;;  %v5121_v49 = vld [vmem:[#allocation2_spill] sm:$0xff]  ;;  %v5122_v44 = vld [vmem:[#allocation3_spill] sm:$0xff]  ;;  %v924_v38 = vmul.f32 %v5124_v62, %v5124_v62 }
 0x17b   :  { %v972_v34 = vadd.f32 %v971_v53, %v933_v30  ;;  %v865_v19 = vsel %vm852_vm1, %v3814_v28, 0.0  ;;  %v930_v36 = vmul.f32 %v3814_v28, %v3814_v28  ;;  %v687_v5 = vadd.f32 %v5122_v44, %v5121_v49 }
 0x17c   :  { %981 = vadd.xlane.f32.xlu1 %v980_v40  ;;  %977 = vadd.xlane.f32.xlu0 %v976_v46  ;;  %v862_v57 = vadd.f32 %v861_v1, %v3822_v7  ;;  %v3835_v58 = vadd.f32 %v3653_v9, %v695_v50  ;;  %v927_v43 = vmul.f32 %v3822_v7, %v3822_v7  ;;  %v853_v9 = vsel %vm852_vm1, %v5124_v62, 0.0 }
 0x17d   :  { %v3843_v56 = vadd.f32 %v5123_v47, %v687_v5  ;;  %v963_v61 = vsel %vm852_vm1, %v930_v36, 0.0  ;;  %v854_v0 = vadd.f32 %v853_v9, %v5125_v31  ;;  %v951_v14 = vsel %vm852_vm1, %v924_v38, 0.0 }
 0x17e   :  { %v866_v33 = vadd.f32 %v865_v19, %v3835_v58  ;;  %v960_v15 = vadd.f32 %v959_v59, %v927_v43  ;;  %v929_v40 = vmul.f32 %v3835_v58, %v3835_v58  ;;  %v2385_v54 = vmov 0  }
 0x17f   :  { %v857_v23 = vsel %vm852_vm1, %v3843_v56, 0.0  ;;  %v926_v10 = vmul.f32 %v3843_v56, %v3843_v56  ;;  %2356 = vset.pattern.permute.xlu0 %v2385_v54  ;;  %2355 = vset.pattern.permute.xlu1 %v2385_v54 }
 0x180   :  { %875 = vadd.xlane.f32.xlu1 %v874_v27  ;;  %871 = vadd.xlane.f32.xlu0 %v870_v6  ;;  %v964_v46 = vadd.f32 %v963_v61, %v929_v40  ;;  %v923_v27 = vmul.f32 %v5125_v31, %v5125_v31  ;;  %v5126_v6 = vld [vmem:[#allocation6_spill] sm:$0xff] }
 0x181   :  { %v858_v12 = vadd.f32 %v857_v23, %v5126_v6  ;;  %v955_v42 = vsel %vm852_vm1, %v926_v10, 0.0  ;;  %v925_v2 = vmul.f32 %v5126_v6, %v5126_v6  ;;  %1868 = vmatprep.mubr.bf16.mxu1 %v2385_v54  ;;  %1698 = vmatprep.mubr.bf16.mxu0 %v2385_v54 }
 0x182   :  { %v952_v4 = vadd.f32 %v951_v14, %v923_v27 }
 0x183   :  { %v956_v48 = vadd.f32 %v955_v42, %v925_v2 }
 0x184   :  { %1005 = vadd.xlane.f32.xlu1 %v1004_v45  ;;  %969 = vadd.xlane.f32.xlu0 %v968_v63 }
 0x188   :  { %973 = vadd.xlane.f32.xlu1 %v972_v34  ;;  %863 = vadd.xlane.f32.xlu0 %v862_v57 }
 0x18c   :  { %867 = vadd.xlane.f32.xlu1 %v866_v33  ;;  %961 = vadd.xlane.f32.xlu0 %v960_v15 }
 0x190   :  { %965 = vadd.xlane.f32.xlu1 %v964_v46  ;;  %855 = vadd.xlane.f32.xlu0 %v854_v0 }
 0x194   :  { %859 = vadd.xlane.f32.xlu1 %v858_v12  ;;  %953 = vadd.xlane.f32.xlu0 %v952_v4 }
 0x198   :  { %957 = vadd.xlane.f32.xlu1 %v956_v48 }
 0x1e5   :  { %v880_v8 = vpop.xlane.xlu0 %879 }
 0x1e6   :  { %v3876_v15 = vmul.f32 0.0051020407, %v880_v8 }
 0x1e8   :  { %v1027_v0 = vmul.f32 %v3876_v15, %v3876_v15 }
 0x1e9   :  { %v884_v45 = vpop.xlane.xlu1 %883 }
 0x1ea   :  { %v3878_v47 = vmul.f32 0.0051020407, %v884_v45 }
 0x1ec   :  { %v1028_v23 = vmul.f32 %v3878_v47, %v3878_v47 }
 0x1ed   :  { %v888_v63 = vpop.xlane.xlu0 %887 }
 0x1ee   :  { %v3872_v49 = vmul.f32 0.0051020407, %v888_v63 }
 0x1f0   :  { %v1029_v9 = vmul.f32 %v3872_v49, %v3872_v49 }
 0x1f1   :  { %v892_v53 = vpop.xlane.xlu1 %891  ;;  %v986_v1 = vpop.xlane.xlu0 %985 }
 0x1f2   :  { %v3868_v57 = vmul.f32 0.0051020407, %v892_v53  ;;  %v1015_v61 = vmul.f32 0.0051020407, %v986_v1 }
 0x1f4   :  { %v1030_v43 = vmul.f32 %v3868_v57, %v3868_v57  ;;  %v1043_v27 = vsub.f32 %v1015_v61, %v1029_v9 }
 0x1f5   :  { %v990_v16 = vpop.xlane.xlu1 %989  ;;  %v896_v30 = vpop.xlane.xlu0 %895 }
 0x1f6   :  { %v1016_v19 = vmul.f32 0.0051020407, %v990_v16  ;;  %v1057_v63 = vadd.f32 0.001, %v1043_v27  ;;  %v3890_v1 = vmul.f32 0.0051020407, %v896_v30 }
 0x1f8   :  { %v1044_v44 = vsub.f32 %v1016_v19, %v1030_v43 }
 0x1f9   :  { %v900_v50 = vpop.xlane.xlu1 %899  ;;  %v994_v34 = vpop.xlane.xlu0 %993 }
 0x1fa   :  { %v1058_v38 = vadd.f32 0.001, %v1044_v44  ;;  %v1031_v44 = vmul.f32 %v3890_v1, %v3890_v1 }
 0x1fc   :  { %2357 = vrsqrt.f32 %v1058_v38 }
 0x1fd   :  { %v998_v59 = vpop.xlane.xlu1 %997  ;;  %v904_v36 = vpop.xlane.xlu0 %903 }
 0x1fe   :  { %v3886_v12 = vmul.f32 0.0051020407, %v904_v36  ;;  %v1017_v36 = vmul.f32 0.0051020407, %v994_v34 }
 0x200   :  { %v1033_v53 = vmul.f32 %v3886_v12, %v3886_v12  ;;  %v1045_v30 = vsub.f32 %v1017_v36, %v1031_v44 }
 0x201   :  { %v1002_v5 = vpop.xlane.xlu1 %1001  ;;  %v3874_v33 = vpop.xlane.xlu0 %907 }
 0x202   :  { %v1019_v48 = vmul.f32 0.0051020407, %v1002_v5  ;;  %v3896_v5 = vmul.f32 0.0051020407, %v900_v50  ;;  %v1086_v50 = vld [vmem:[%s5097_s3 + $0x48] sm:$0xff] }
 0x204   :  { %v1047_v19 = vsub.f32 %v1019_v48, %v1033_v53  ;;  %v1083_v48 = vld [vmem:[%s5097_s3 + $0x30] sm:$0xff] }
 0x205   :  { %v982_v40 = vpop.xlane.xlu1 %981  ;;  %v978_v46 = vpop.xlane.xlu0 %977 }
 0x206   :  { %v1014_v14 = vmul.f32 0.0051020407, %v982_v40  ;;  %v1013_v10 = vmul.f32 0.0051020407, %v978_v46  ;;  %v1061_v9 = vadd.f32 0.001, %v1047_v19 }
 0x207   :  { %v1018_v46 = vmul.f32 0.0051020407, %v998_v59  ;;  %v1084_v59 = vld [vmem:[%s5097_s3 + $0x38] sm:$0xff] }
 0x208   :  { %v1042_v4 = vsub.f32 %v1014_v14, %v1028_v23  ;;  %v1041_v42 = vsub.f32 %v1013_v10, %v1027_v0  ;;  %v1032_v23 = vmul.f32 %v3896_v5, %v3896_v5 }
 0x209   :  { %v876_v2 = vpop.xlane.xlu1 %875  ;;  %v2358_v10 = vpop.eup %2357 }
 0x20a   :  { %v1056_v8 = vadd.f32 0.001, %v1042_v4  ;;  %v1055_v45 = vadd.f32 0.001, %v1041_v42  ;;  %v3892_v43 = vmul.f32 0.0051020407, %v876_v2  ;;  %v872_v34 = vpop.xlane.xlu0 %871  ;;  %v1046_v2 = vsub.f32 %v1018_v46, %v1032_v23 }
 0x20b   :  { %v1059_v42 = vadd.f32 0.001, %v1045_v30  ;;  %v1111_v46 = vld [vmem:[%s5098_s4 + $0x30] sm:$0xff]  ;;  %v3922_v23 = vmul.f32 0.0051020407, %v3874_v33 }
 0x20c   :  { %2359 = vrsqrt.f32 %v1056_v8  ;;  %v1026_v38 = vmul.f32 %v3892_v43, %v3892_v43 }
 0x20d   :  { %2361 = vrsqrt.f32 %v1055_v45  ;;  %v1006_v16 = vpop.xlane.xlu1 %1005  ;;  %v1034_v33 = vmul.f32 %v3922_v23, %v3922_v23 }
 0x20e   :  { %2363 = vrsqrt.f32 %v1057_v63  ;;  %v1100_v63 = vmul.f32 %v2358_v10, %v1086_v50 }
 0x20f   :  { %2365 = vrsqrt.f32 %v1061_v9 }
 0x211   :  { %v974_v61 = vpop.xlane.xlu1 %973 }
 0x212   :  { %v1012_v40 = vmul.f32 0.0051020407, %v974_v61  ;;  %v1060_v61 = vadd.f32 0.001, %v1046_v2  ;;  %v1020_v2 = vmul.f32 0.0051020407, %v1006_v16 }
 0x214   :  { %v1040_v0 = vsub.f32 %v1012_v40, %v1026_v38  ;;  %v970_v40 = vpop.xlane.xlu0 %969 }
 0x215   :  { %v868_v14 = vpop.xlane.xlu1 %867 }
 0x216   :  { %v1054_v27 = vadd.f32 0.001, %v1040_v0  ;;  %v3902_v4 = vmul.f32 0.0051020407, %v868_v14  ;;  %v1085_v0 = vld [vmem:[%s5097_s3 + $0x40] sm:$0xff] }
 0x218   :  { %2367 = vrsqrt.f32 %v1054_v27  ;;  %v1024_v19 = vmul.f32 %v3902_v4, %v3902_v4 }
 0x219   :  { %v2360_v8 = vpop.eup %2359  ;;  %v966_v45 = vpop.xlane.xlu1 %965  ;;  %2369 = vrsqrt.f32 %v1059_v42  ;;  %v1128_v42 = vmul.f32 %v1100_v63, %v3868_v57 }
 0x21a   :  { %v2362_v53 = vpop.eup %2361  ;;  %v1010_v36 = vmul.f32 0.0051020407, %v966_v45  ;;  %v1098_v44 = vmul.f32 %v2360_v8, %v1084_v59  ;;  %2371 = vrsqrt.f32 %v1060_v61  ;;  %v1089_v61 = vld [vmem:[%s5097_s3 + $0x60] sm:$0xff] }
 0x21b   :  { %v1097_v9 = vmul.f32 %v2362_v53, %v1083_v48  ;;  %v2364_v38 = vpop.eup %2363  ;;  %v1114_v48 = vld [vmem:[%s5098_s4 + $0x48] sm:$0xff] }
 0x21c   :  { %v1038_v30 = vsub.f32 %v1010_v36, %v1024_v19  ;;  %1184 = vperm.xlu0 %2356, %v1098_v44   ;;  %v1099_v8 = vmul.f32 %v2364_v38, %v1085_v0  ;;  %v1142_v19 = vsub.f32 %v1114_v48, %v1128_v42  ;;  %v2366_v16 = vpop.eup %2365  ;;  %v1048_v36 = vsub.f32 %v1020_v2, %v1034_v33  ;;  %v1113_v38 = vld [vmem:[%s5098_s4 + $0x40] sm:$0xff] }
 0x21d   :  { %1179 = vperm.xlu1 %2355, %v1097_v9   ;;  %v860_v14 = vpop.xlane.xlu1 %859  ;;  %v1125_v10 = vmul.f32 %v1097_v9, %v3876_v15  ;;  %v864_v15 = vpop.xlane.xlu0 %863  ;;  %v3944_v0 = vmul.f32 %v2366_v16, %v1089_v61  ;;  %v1011_v42 = vmul.f32 0.0051020407, %v970_v40 }
 0x21e   :  { %v1052_v27 = vadd.f32 0.001, %v1038_v30  ;;  %v3925_v50 = vmul.f32 0.0051020407, %v860_v14  ;;  %v3942_v30 = vmul.f32 0.0051020407, %v872_v34  ;;  %v1126_v14 = vmul.f32 %v1098_v44, %v3878_v47 }
 0x21f   :  { %v1139_v59 = vsub.f32 %v1111_v46, %v1125_v10  ;;  %v1087_v47 = vld [vmem:[%s5097_s3 + $0x50] sm:$0xff] }
 0x220   :  { %1194 = vperm.xlu0 %2356, %v1100_v63   ;;  %2373 = vrsqrt.f32 %v1052_v27  ;;  %v1022_v53 = vmul.f32 %v3925_v50, %v3925_v50  ;;  %v1127_v63 = vmul.f32 %v1099_v8, %v3872_v49  ;;  %v1062_v27 = vadd.f32 0.001, %v1048_v36  ;;  %v1112_v49 = vld [vmem:[%s5098_s4 + $0x38] sm:$0xff] }
 0x221   :  { %1277 = vperm.xlu1 %2355, %v1139_v59   ;;  %v958_v45 = vpop.xlane.xlu1 %957  ;;  %v1082_v59 = vld [vmem:[%s5097_s3 + $0x28] sm:$0xff]  ;;  %v962_v48 = vpop.xlane.xlu0 %961  ;;  %v1025_v44 = vmul.f32 %v3942_v30, %v3942_v30  ;;  %v1140_v40 = vsub.f32 %v1112_v49, %v1126_v14 }
 0x222   :  { %v1008_v57 = vmul.f32 0.0051020407, %v958_v45  ;;  %v1141_v2 = vsub.f32 %v1113_v38, %v1127_v63 }
 0x223   :  { %v1039_v33 = vsub.f32 %v1011_v42, %v1025_v44 }
 0x224   :  { %v1036_v9 = vsub.f32 %v1008_v57, %v1022_v53  ;;  %1292 = vperm.xlu0 %2356, %v1142_v19   ;;  %v1088_v57 = vld [vmem:[%s5097_s3 + $0x58] sm:$0xff]  ;;  %v3962_v19 = vmul.f32 0.0051020407, %v864_v15  ;;  %v1115_v15 = vld [vmem:[%s5098_s4 + $0x50] sm:$0xff] }
 0x225   :  { %1189 = vperm.xlu1 %2355, %v1099_v8   ;;  %v2368_v10 = vpop.eup %2367  ;;  %v856_v16 = vpop.xlane.xlu0 %855  ;;  %v1053_v63 = vadd.f32 0.001, %v1039_v33 }
 0x226   :  { %v1050_v46 = vadd.f32 0.001, %v1036_v9  ;;  %v2370_v34 = vpop.eup %2369  ;;  %v1096_v8 = vmul.f32 %v2368_v10, %v1082_v59  ;;  %v1009_v9 = vmul.f32 0.0051020407, %v962_v48  ;;  %v1080_v10 = vld [vmem:[%s5097_s3 + $0x18] sm:$0xff] }
 0x227   :  { %v1101_v45 = vmul.f32 %v2370_v34, %v1087_v47  ;;  %v2372_v53 = vpop.eup %2371  ;;  %v1116_v34 = vld [vmem:[%s5098_s4 + $0x58] sm:$0xff]  ;;  %v909_v48 = vmul.f32 0.0051020407, %v856_v16 }
 0x228   :  { %1209 = vperm.xlu0 %2356, %v3944_v0   ;;  %2375 = vrsqrt.f32 %v1050_v46  ;;  %v1124_v36 = vmul.f32 %v1096_v8, %v3892_v43  ;;  %v1102_v38 = vmul.f32 %v2372_v53, %v1088_v57  ;;  %v1110_v46 = vld [vmem:[%s5098_s4 + $0x28] sm:$0xff]  ;;  %v1023_v43 = vmul.f32 %v3962_v19, %v3962_v19 }
 0x229   :  { %1287 = vperm.xlu1 %2355, %v1141_v2   ;;  %2377 = vrsqrt.f32 %v1062_v27  ;;  %v1129_v14 = vmul.f32 %v1101_v45, %v3890_v1  ;;  %v954_v59 = vpop.xlane.xlu0 %953  ;;  %v1090_v57 = vld [vmem:[%s5097_s3 + $0x68] sm:$0xff]  ;;  %v1021_v16 = vmul.f32 %v909_v48, %v909_v48 }
 0x22a   :  { %v1138_v27 = vsub.f32 %v1110_v46, %v1124_v36  ;;  %2379 = vrsqrt.f32 %v1053_v63  ;;  %v1037_v2 = vsub.f32 %v1009_v9, %v1023_v43  ;;  %v1130_v1 = vmul.f32 %v1102_v38, %v3896_v5  ;;  %v1078_v5 = vld [vmem:[%s5097_s3 + $0x8] sm:$0xff] }
 0x22b   :  { %v1143_v49 = vsub.f32 %v1115_v15, %v1129_v14  ;;  %v1131_v9 = vmul.f32 %v3944_v0, %v3886_v12  ;;  %v1106_v15 = vld [vmem:[%s5098_s4 + $0x8] sm:$0xff]  ;;  %v1081_v0 = vld [vmem:[%s5097_s3 + $0x20] sm:$0xff] }
 0x22c   :  { %1282 = vperm.xlu0 %2356, %v1140_v40   ;;  %v1051_v40 = vadd.f32 0.001, %v1037_v2  ;;  %v1144_v33 = vsub.f32 %v1116_v34, %v1130_v1  ;;  %v1118_v12 = vld [vmem:[%s5098_s4 + $0x68] sm:$0xff]  ;;  %v1109_v1 = vld [vmem:[%s5098_s4 + $0x20] sm:$0xff] }
 0x22d   :  { %1199 = vperm.xlu1 %2355, %v1101_v45   ;;  %v2374_v61 = vpop.eup %2373  ;;  %v1108_v45 = vld [vmem:[%s5098_s4 + $0x18] sm:$0xff] }
 0x22e   :  { %v1094_v42 = vmul.f32 %v2374_v61, %v1080_v10  ;;  %2381 = vrsqrt.f32 %v1051_v40 }
 0x230   :  { %1174 = vperm.xlu0 %2356, %v1096_v8   ;;  %v1122_v47 = vmul.f32 %v1094_v42, %v3902_v4  ;;  %v1007_v8 = vmul.f32 0.0051020407, %v954_v59  ;;  %v1079_v59 = vld [vmem:[%s5097_s3 + $0x10] sm:$0xff] }
 0x231   :  { %1204 = vperm.xlu1 %2355, %v1102_v38   ;;  %v1117_v38 = vld [vmem:[%s5098_s4 + $0x60] sm:$0xff] }
 0x232   :  { %v1136_v4 = vsub.f32 %v1108_v45, %v1122_v47  ;;  %v1035_v61 = vsub.f32 %v1007_v8, %v1021_v16  ;;  %v1145_v10 = vsub.f32 %v1117_v38, %v1131_v9  ;;  %v1077_v8 = vld [vmem:[%s5097_s3] sm:$0xff] }
 0x234   :  { %1272 = vperm.xlu0 %2356, %v1138_v27   ;;  %v1049_v14 = vadd.f32 0.001, %v1035_v61 }
 0x235   :  { %1297 = vperm.xlu1 %2355, %v1143_v49   ;;  %v2376_v44 = vpop.eup %2375 }
 0x236   :  { %v2378_v53 = vpop.eup %2377  ;;  %v1092_v36 = vmul.f32 %v2376_v44, %v1078_v5  ;;  %2383 = vrsqrt.f32 %v1049_v14 }
 0x237   :  { %v1104_v63 = vmul.f32 %v2378_v53, %v1090_v57  ;;  %v2380_v27 = vpop.eup %2379  ;;  %v1105_v53 = vld [vmem:[%s5098_s4] sm:$0xff] }
 0x238   :  { %1164 = vperm.xlu0 %2356, %v1094_v42   ;;  %v1120_v46 = vmul.f32 %v1092_v36, %v3925_v50  ;;  %v1095_v2 = vmul.f32 %v2380_v27, %v1081_v0 }
 0x239   :  { %1302 = vperm.xlu1 %2355, %v1144_v33   ;;  %v1132_v43 = vmul.f32 %v1104_v63, %v3922_v23 }
 0x23a   :  { %v1134_v50 = vsub.f32 %v1106_v15, %v1120_v46  ;;  %v1123_v49 = vmul.f32 %v1095_v2, %v3942_v30  ;;  %v1107_v30 = vld [vmem:[%s5098_s4 + $0x10] sm:$0xff] }
 0x23b   :  { %v1146_v42 = vsub.f32 %v1118_v12, %v1132_v43  ;;  %v2382_v23 = vpop.eup %2381 }
 0x23c   :  { %1262 = vperm.xlu0 %2356, %v1136_v4   ;;  %v1137_v34 = vsub.f32 %v1109_v1, %v1123_v49  ;;  %v1093_v47 = vmul.f32 %v2382_v23, %v1079_v59  ;;  %v1366_v1 = vld [vmem:[%s5099_s5 + $0xb8] sm:$0xff] }
 0x23d   :  { %1214 = vperm.xlu1 %2355, %v1104_v63  }
 0x23e   :  { %v1121_v44 = vmul.f32 %v1093_v47, %v3962_v19 }
 0x240   :  { %1154 = vperm.xlu0 %2356, %v1092_v36   ;;  %v1135_v33 = vsub.f32 %v1107_v30, %v1121_v44 }
 0x241   :  { %1307 = vperm.xlu1 %2355, %v1145_v10  }
 0x243   :  { %v2384_v40 = vpop.eup %2383 }
 0x244   :  { %1252 = vperm.xlu0 %2356, %v1134_v50   ;;  %v1091_v45 = vmul.f32 %v2384_v40, %v1077_v8 }
 0x245   :  { %1312 = vperm.xlu1 %2355, %v1146_v42  }
 0x246   :  { %v1119_v5 = vmul.f32 %v1091_v45, %v909_v48 }
 0x248   :  { %v1133_v19 = vsub.f32 %v1105_v53, %v1119_v5  ;;  %v1364_v53 = vld [vmem:[%s5099_s5 + $0xa8] sm:$0xff] }
 0x249   :  { %1169 = vperm.xlu1 %2355, %v1095_v2  }
 0x24d   :  { %1267 = vperm.xlu1 %2355, %v1137_v34  }
 0x251   :  { %1159 = vperm.xlu1 %2355, %v1093_v47  }
 0x255   :  { %1257 = vperm.xlu1 %2355, %v1135_v33  }
 0x259   :  { %1149 = vperm.xlu1 %2355, %v1091_v45  }
 0x25d   :  { %1247 = vperm.xlu1 %2355, %v1133_v19  }
 0x297   :  { %v4024_v57 = vpop.permute.xlu0 %1184 }
 0x298   :  { %v4026_v16 = vpop.permute.xlu1 %1179 }
 0x29b   :  { %v1195_v36 = vpop.permute.xlu0 %1194 }
 0x29c   :  { %v4028_v4 = vpop.permute.xlu1 %1277  ;;  %v1236_v30 = vmul.f32 %v1195_v36, %v3690_v52 }
 0x29f   :  { %v4030_v63 = vpop.permute.xlu0 %1292 }
 0x2a0   :  { %v1190_v61 = vpop.permute.xlu1 %1189 }
 0x2a3   :  { %v1210_v48 = vpop.permute.xlu0 %1209 }
 0x2a4   :  { %v1288_v9 = vpop.permute.xlu1 %1287  ;;  %v1241_v42 = vmul.f32 %v1210_v48, %v3735_v24  ;;  %v1242_v2 = vmul.f32 %v1210_v48, %v3732_v17  ;;  %v1234_v24 = vmul.f32 %v1190_v61, %v3679_v26 }
 0x2a6   :  { %v1332_v45 = vadd.f32 %v1288_v9, %v1234_v24 }
 0x2a7   :  { %v4032_v14 = vpop.permute.xlu0 %1282 }
 0x2a8   :  { %v1200_v38 = vpop.permute.xlu1 %1199 }
 0x2a9   :  { %v1238_v49 = vmul.f32 %v1200_v38, %v3704_v51  ;;  %v1368_v51 = vld [vmem:[%s5099_s5 + $0xc8] sm:$0xff]  ;;  %v1237_v5 = vmul.f32 %v1200_v38, %v3707_v20 }
 0x2aa   :  { %v1360_v20 = vld [vmem:[%s5099_s5 + $0x88] sm:$0xff] }
 0x2ab   :  { %v4034_v43 = vpop.permute.xlu0 %1174 }
 0x2ac   :  { %v1205_v46 = vpop.permute.xlu1 %1204 }
 0x2ad   :  { %v1240_v0 = vmul.f32 %v1205_v46, %v3718_v60  ;;  %v1367_v60 = vld [vmem:[%s5099_s5 + $0xc0] sm:$0xff]  ;;  %v1239_v17 = vmul.f32 %v1205_v46, %v3721_v35  ;;  %v1365_v46 = vld [vmem:[%s5099_s5 + $0xb0] sm:$0xff] }
 0x2af   :  { %v4036_v12 = vpop.permute.xlu0 %1272 }
 0x2b0   :  { %v1298_v10 = vpop.permute.xlu1 %1297 }
 0x2b1   :  { %v1336_v8 = vadd.f32 %v1298_v10, %v1238_v49  ;;  %v1335_v38 = vadd.f32 %v1298_v10, %v1237_v5  ;;  %v1334_v49 = vadd.f32 %v4030_v63, %v1236_v30 }
 0x2b3   :  { %v4062_v33 = vpop.permute.xlu0 %1164 }
 0x2b4   :  { %v1303_v15 = vpop.permute.xlu1 %1302 }
 0x2b5   :  { %v1338_v23 = vadd.f32 %v1303_v15, %v1240_v0  ;;  %v1337_v19 = vadd.f32 %v1303_v15, %v1239_v17 }
 0x2b7   :  { %v1394_v48 = vadd.f32 %v1366_v1, %v1338_v23  ;;  %v1363_v23 = vld [vmem:[%s5099_s5 + $0xa0] sm:$0xff]  ;;  %v1392_v1 = vadd.f32 %v1364_v53, %v1336_v8  ;;  %v4091_v17 = vpop.permute.xlu0 %1262 }
 0x2b8   :  { %v1215_v27 = vpop.permute.xlu1 %1214 }
 0x2b9   :  { %v1243_v59 = vmul.f32 %v1215_v27, %v3753_v22  ;;  %v1244_v34 = vmul.f32 %v1215_v27, %v3746_v37  ;;  %v1369_v22 = vld [vmem:[%s5099_s5 + $0xd0] sm:$0xff]  ;;  %v1370_v37 = vld [vmem:[%s5099_s5 + $0xd8] sm:$0xff] }
 0x2bc   :  { %v1308_v50 = vpop.permute.xlu1 %1307 }
 0x2bd   :  { %v1339_v47 = vadd.f32 %v1308_v50, %v1241_v42  ;;  %v1340_v44 = vadd.f32 %v1308_v50, %v1242_v2  ;;  %v1232_v42 = vmul.f32 %v4024_v57, %v3672_v11  ;;  %v1233_v2 = vmul.f32 %v1190_v61, %v3681_v21  ;;  %v1362_v61 = vld [vmem:[%s5099_s5 + $0x98] sm:$0xff] }
 0x2be   :  { %v1230_v11 = vmul.f32 %v4026_v16, %v3665_v55  ;;  %v1235_v21 = vmul.f32 %v1195_v36, %v3693_v3  ;;  %v1410_v55 = vpack.c.bf16 %v1394_v48, %v1392_v1  ;;  %v1231_v3 = vmul.f32 %v4024_v57, %v3674_v29  ;;  %v1356_v57 = vld [vmem:[%s5099_s5 + $0x68] sm:$0xff] }
 0x2bf   :  { %v1395_v27 = vadd.f32 %v1367_v60, %v1339_v47  ;;  %v1396_v52 = vadd.f32 %v1368_v51, %v1340_v44  ;;  %v1331_v10 = vadd.f32 %v1288_v9, %v1233_v2  ;;  %v1393_v60 = vadd.f32 %v1365_v46, %v1337_v19  ;;  %v1359_v47 = vld [vmem:[%s5099_s5 + $0x80] sm:$0xff]  ;;  %v1358_v9 = vld [vmem:[%s5099_s5 + $0x78] sm:$0xff] }
 0x2c0   :  { %v1313_v40 = vpop.permute.xlu1 %1312  ;;  %v1388_v44 = vadd.f32 %v1360_v20, %v1332_v45  ;;  %v1330_v24 = vadd.f32 %v4032_v14, %v1232_v42  ;;  %v1333_v36 = vadd.f32 %v4030_v63, %v1235_v21  ;;  %v1391_v51 = vadd.f32 %v1363_v23, %v1335_v38  ;;  %v1357_v45 = vld [vmem:[%s5099_s5 + $0x70] sm:$0xff]  ;;  %v1354_v42 = vld [vmem:[%s5099_s5 + $0x58] sm:$0xff]  ;;  %v1351_v38 = vld [vmem:[%s5099_s5 + $0x40] sm:$0xff] }
 0x2c1   :  { %v1341_v26 = vadd.f32 %v1313_v40, %v1243_v59  ;;  %v1342_v35 = vadd.f32 %v1313_v40, %v1244_v34  ;;  %v1361_v40 = vld [vmem:[%s5099_s5 + $0x90] sm:$0xff]  ;;  %v1390_v30 = vadd.f32 %v1362_v61, %v1334_v49  ;;  %v1229_v29 = vmul.f32 %v4026_v16, %v3667_v18  ;;  %v1350_v61 = vld [vmem:[%s5099_s5 + $0x38] sm:$0xff] }
 0x2c2   :  { %v1387_v63 = vadd.f32 %v1359_v47, %v1331_v10  ;;  %v1386_v5 = vadd.f32 %v1358_v9, %v1330_v24  ;;  %v1389_v16 = vadd.f32 %v1361_v40, %v1333_v36  ;;  %v1224_v20 = vmul.f32 %v4062_v33, %v3814_v28  ;;  %v1353_v28 = vld [vmem:[%s5099_s5 + $0x50] sm:$0xff] }
 0x2c3   :  { %v1397_v0 = vadd.f32 %v1369_v22, %v1341_v26  ;;  %v1398_v50 = vadd.f32 %v1370_v37, %v1342_v35  ;;  %v1328_v37 = vadd.f32 %v4028_v4, %v1230_v11  ;;  %v1329_v26 = vadd.f32 %v4032_v14, %v1231_v3  ;;  %v1352_v14 = vld [vmem:[%s5099_s5 + $0x48] sm:$0xff] }
 0x2c4   :  { %v1170_v15 = vpop.permute.xlu1 %1169  ;;  %v1409_v35 = vpack.c.bf16 %v1393_v60, %v1391_v51  ;;  %v1408_v19 = vpack.c.bf16 %v1390_v30, %v1388_v44  ;;  %v1327_v18 = vadd.f32 %v4028_v4, %v1229_v29  ;;  %v1407_v4 = vpack.c.bf16 %v1389_v16, %v1387_v63  ;;  %v1347_v44 = vld [vmem:[%s5099_s5 + $0x20] sm:$0xff]  ;;  %v1447_v16 = vld [vmem:[%s5100_s6 + $0x110] sm:$0xff] }
 0x2c5   :  { %v1411_v59 = vpack.c.bf16 %v1397_v0, %v1395_v27  ;;  %v1412_v34 = vpack.c.bf16 %v1398_v50, %v1396_v52  ;;  %v1226_v8 = vmul.f32 %v1170_v15, %v3765_v13  ;;  %v1228_v13 = vmul.f32 %v4034_v43, %v3768_v25  ;;  %v1355_v27 = vld [vmem:[%s5099_s5 + $0x60] sm:$0xff]  ;;  %v1155_v0 = vpop.permute.xlu0 %1154 }
 0x2c6   :  { %v1225_v48 = vmul.f32 %v1170_v15, %v3789_v32  ;;  %v1384_v52 = vadd.f32 %v1356_v57, %v1328_v37  ;;  %v1385_v50 = vadd.f32 %v1357_v45, %v1329_v26  ;;  %v1227_v32 = vmul.f32 %v4034_v43, %v3792_v41  ;;  %v1348_v43 = vld [vmem:[%s5099_s5 + $0x28] sm:$0xff]  ;;  %v1343_v26 = vld [vmem:[%s5099_s5] sm:$0xff] }
 0x2c7   :  { %1668 = vmatprep.subr.bf16.mxu0 %v1412_v34  ;;  %2340 = vmatprep.subr.bf16.mxu1 %v1412_v34  ;;  %v1326_v25 = vadd.f32 %v4036_v12, %v1228_v13  ;;  %v1383_v1 = vadd.f32 %v1355_v27, %v1327_v18  ;;  %v1219_v9 = vmul.f32 %v1155_v0, %v5126_v6 }
 0x2c8   :  { %v1268_v22 = vpop.permute.xlu1 %1267  ;;  %1669 = vmatpush1.bf16.msra.mxu0 %v1411_v59  ;;  %2347 = vmatpush1.bf16.msra.mxu1 %v1411_v59  ;;  %v1406_v23 = vpack.c.bf16 %v1386_v5, %v1384_v52  ;;  %v1325_v59 = vadd.f32 %v4036_v12, %v1227_v32  ;;  %v1415_v32 = vld [vmem:[%s5100_s6 + $0x10] sm:$0xff] }
 0x2c9   :  { %1670 = vmatprep.subr.bf16.mxu0 %v1410_v55  ;;  %2341 = vmatprep.subr.bf16.mxu1 %v1410_v55  ;;  %v1324_v53 = vadd.f32 %v1268_v22, %v1226_v8  ;;  %v1323_v2 = vadd.f32 %v1268_v22, %v1225_v48  ;;  %v1382_v11 = vadd.f32 %v1354_v42, %v1326_v25  ;;  %v1253_v47 = vpop.permute.xlu0 %1252  ;;  %v1448_v48 = vld [vmem:[%s5100_s6 + $0x118] sm:$0xff] }
 0x2ca   :  { %v1405_v12 = vpack.c.bf16 %v1385_v50, %v1383_v1  ;;  %v1381_v3 = vadd.f32 %v1353_v28, %v1325_v59  ;;  %v1220_v22 = vmul.f32 %v1155_v0, %v3843_v56  ;;  %v1317_v37 = vadd.f32 %v1253_v47, %v1219_v9  ;;  %v1346_v56 = vld [vmem:[%s5099_s5 + $0x18] sm:$0xff]  ;;  %v1450_v50 = vld [vmem:[%s5100_s6 + $0x128] sm:$0xff]  ;;  %v1459_v9 = vld [vmem:[%s5100_s6 + $0x170] sm:$0xff] }
 0x2cb   :  { %v1380_v15 = vadd.f32 %v1352_v14, %v1324_v53  ;;  %v1379_v10 = vadd.f32 %v1351_v38, %v1323_v2  ;;  %v1413_v14 = vld [vmem:[%s5100_s6] sm:$0xff]  ;;  %v1514_v25 = vpack.c.bf16 %v1448_v48, %v1447_v16  ;;  %v1416_v42 = vld [vmem:[%s5100_s6 + $0x18] sm:$0xff]  ;;  %v1451_v38 = vld [vmem:[%s5100_s6 + $0x130] sm:$0xff] }
 0x2cc   :  { %v1160_v46 = vpop.permute.xlu1 %1159  ;;  %1671 = vmatpush1.bf16.msra.mxu0 %v1409_v35  ;;  %2348 = vmatpush1.bf16.msra.mxu1 %v1409_v35  ;;  %v1318_v6 = vadd.f32 %v1253_v47, %v1220_v22  ;;  %v1344_v35 = vld [vmem:[%s5099_s5 + $0x8] sm:$0xff]  ;;  %v1420_v28 = vld [vmem:[%s5100_s6 + $0x38] sm:$0xff]  ;;  %v1457_v47 = vld [vmem:[%s5100_s6 + $0x160] sm:$0xff] }
 0x2cd   :  { %1672 = vmatprep.subr.bf16.mxu0 %v1408_v19  ;;  %2342 = vmatprep.subr.bf16.mxu1 %v1408_v19  ;;  %v1222_v49 = vmul.f32 %v1160_v46, %v3799_v39  ;;  %v1221_v41 = vmul.f32 %v1160_v46, %v3822_v7  ;;  %v1322_v39 = vadd.f32 %v4091_v17, %v1224_v20  ;;  %v1414_v46 = vld [vmem:[%s5100_s6 + $0x8] sm:$0xff]  ;;  %v1468_v16 = vld [vmem:[%s5100_s6 + $0x1b8] sm:$0xff]  ;;  %v1433_v48 = vld [vmem:[%s5100_s6 + $0xa0] sm:$0xff] }
 0x2ce   :  { %v1223_v7 = vmul.f32 %v4062_v33, %v3835_v58  ;;  %v1404_v55 = vpack.c.bf16 %v1382_v11, %v1380_v15  ;;  %v1349_v58 = vld [vmem:[%s5099_s5 + $0x30] sm:$0xff]  ;;  %v1403_v40 = vpack.c.bf16 %v1381_v3, %v1379_v10  ;;  %v1374_v53 = vadd.f32 %v1346_v56, %v1318_v6  ;;  %v1452_v15 = vld [vmem:[%s5100_s6 + $0x138] sm:$0xff]  ;;  %v1429_v56 = vld [vmem:[%s5100_s6 + $0x80] sm:$0xff] }
 0x2cf   :  { %v1378_v33 = vadd.f32 %v1350_v61, %v1322_v39  ;;  %v1497_v0 = vpack.c.bf16 %v1414_v46, %v1413_v14  ;;  %v1498_v20 = vpack.c.bf16 %v1416_v42, %v1415_v32  ;;  %v1516_v1 = vpack.c.bf16 %v1452_v15, %v1451_v38  ;;  %v1422_v61 = vld [vmem:[%s5100_s6 + $0x48] sm:$0xff]  ;;  %v1428_v6 = vld [vmem:[%s5100_s6 + $0x78] sm:$0xff]  ;;  %v1471_v42 = vld [vmem:[%s5100_s6 + $0x1d0] sm:$0xff] }
 0x2d0   :  { %v1258_v34 = vpop.permute.xlu1 %1257  ;;  %1673 = vmatpush1.bf16.msra.mxu0 %v1407_v4  ;;  %2349 = vmatpush1.bf16.msra.mxu1 %v1407_v4  ;;  %v1321_v36 = vadd.f32 %v4091_v17, %v1223_v7  ;;  %v1345_v17 = vld [vmem:[%s5099_s5 + $0x10] sm:$0xff]  ;;  %v1449_v4 = vld [vmem:[%s5100_s6 + $0x120] sm:$0xff]  ;;  %v1434_v14 = vld [vmem:[%s5100_s6 + $0xa8] sm:$0xff] }
 0x2d1   :  { %v1320_v21 = vadd.f32 %v1258_v34, %v1222_v49  ;;  %1674 = vmatprep.subr.bf16.mxu0 %v1406_v23  ;;  %2343 = vmatprep.subr.bf16.mxu1 %v1406_v23  ;;  %v1319_v60 = vadd.f32 %v1258_v34, %v1221_v41  ;;  %v1373_v13 = vadd.f32 %v1345_v17, %v1317_v37  ;;  %v1417_v49 = vld [vmem:[%s5100_s6 + $0x20] sm:$0xff]  ;;  %v1418_v23 = vld [vmem:[%s5100_s6 + $0x28] sm:$0xff]  ;;  %v1419_v34 = vld [vmem:[%s5100_s6 + $0x30] sm:$0xff] }
 0x2d2   :  { %v1377_v63 = vadd.f32 %v1349_v58, %v1321_v36  ;;  %v1515_v2 = vpack.c.bf16 %v1450_v50, %v1449_v4  ;;  %v1499_v59 = vpack.c.bf16 %v1418_v23, %v1417_v49  ;;  %v1453_v41 = vld [vmem:[%s5100_s6 + $0x140] sm:$0xff]  ;;  %v1500_v39 = vpack.c.bf16 %v1420_v28, %v1419_v34  ;;  %v1427_v17 = vld [vmem:[%s5100_s6 + $0x70] sm:$0xff]  ;;  %v1436_v4 = vld [vmem:[%s5100_s6 + $0xb8] sm:$0xff] }
 0x2d3   :  { %v1376_v24 = vadd.f32 %v1348_v43, %v1320_v21  ;;  %v1375_v30 = vadd.f32 %v1347_v44, %v1319_v60  ;;  %v1454_v43 = vld [vmem:[%s5100_s6 + $0x148] sm:$0xff]  ;;  %v1455_v21 = vld [vmem:[%s5100_s6 + $0x150] sm:$0xff]  ;;  %v1421_v7 = vld [vmem:[%s5100_s6 + $0x40] sm:$0xff] }
 0x2d4   :  { %v1150_v51 = vpop.permute.xlu1 %1149  ;;  %1675 = vmatpush1.bf16.msra.mxu0 %v1405_v12  ;;  %2350 = vmatpush1.bf16.msra.mxu1 %v1405_v12  ;;  %v1517_v11 = vpack.c.bf16 %v1454_v43, %v1453_v41  ;;  %v1456_v12 = vld [vmem:[%s5100_s6 + $0x158] sm:$0xff]  ;;  %v1501_v60 = vpack.c.bf16 %v1422_v61, %v1421_v7  ;;  %v1458_v44 = vld [vmem:[%s5100_s6 + $0x168] sm:$0xff]  ;;  %v1425_v58 = vld [vmem:[%s5100_s6 + $0x60] sm:$0xff] }
 0x2d5   :  { %1676 = vmatprep.subr.bf16.mxu0 %v1404_v55  ;;  %2344 = vmatprep.subr.bf16.mxu1 %v1404_v55  ;;  %v1217_v8 = vmul.f32 %v1150_v51, %v5125_v31  ;;  %v1218_v29 = vmul.f32 %v1150_v51, %v5124_v62  ;;  %v1402_v57 = vpack.c.bf16 %v1378_v33, %v1376_v24  ;;  %v1423_v24 = vld [vmem:[%s5100_s6 + $0x50] sm:$0xff]  ;;  %v1424_v55 = vld [vmem:[%s5100_s6 + $0x58] sm:$0xff]  ;;  %v1426_v33 = vld [vmem:[%s5100_s6 + $0x68] sm:$0xff] }
 0x2d6   :  { %v1401_v62 = vpack.c.bf16 %v1377_v63, %v1375_v30  ;;  %v1518_v10 = vpack.c.bf16 %v1456_v12, %v1455_v21  ;;  %v1519_v3 = vpack.c.bf16 %v1458_v44, %v1457_v47  ;;  %v1502_v36 = vpack.c.bf16 %v1424_v55, %v1423_v24  ;;  %v1460_v51 = vld [vmem:[%s5100_s6 + $0x178] sm:$0xff]  ;;  %v1462_v30 = vld [vmem:[%s5100_s6 + $0x188] sm:$0xff]  ;;  %v1473_v23 = vld [vmem:[%s5100_s6 + $0x1e0] sm:$0xff] }
 0x2d7   :  { %v1520_v22 = vpack.c.bf16 %v1460_v51, %v1459_v9  ;;  %v1503_v37 = vpack.c.bf16 %v1426_v33, %v1425_v58  ;;  %v1464_v63 = vld [vmem:[%s5100_s6 + $0x198] sm:$0xff]  ;;  %v1438_v38 = vld [vmem:[%s5100_s6 + $0xc8] sm:$0xff]  ;;  %v1475_v28 = vld [vmem:[%s5100_s6 + $0x1f0] sm:$0xff] }
 0x2d8   :  { %v1248_v45 = vpop.permute.xlu1 %1247  ;;  %1677 = vmatpush1.bf16.msra.mxu0 %v1403_v40  ;;  %2351 = vmatpush1.bf16.msra.mxu1 %v1403_v40  ;;  %v1461_v40 = vld [vmem:[%s5100_s6 + $0x180] sm:$0xff]  ;;  %v1440_v41 = vld [vmem:[%s5100_s6 + $0xd8] sm:$0xff]  ;;  %v1442_v21 = vld [vmem:[%s5100_s6 + $0xe8] sm:$0xff] }
 0x2d9   :  { %v1315_v31 = vadd.f32 %v1248_v45, %v1217_v8  ;;  %v1316_v5 = vadd.f32 %v1248_v45, %v1218_v29  ;;  %1678 = vmatprep.subr.bf16.mxu0 %v1402_v57  ;;  %2345 = vmatprep.subr.bf16.mxu1 %v1402_v57  ;;  %v1521_v8 = vpack.c.bf16 %v1462_v30, %v1461_v40  ;;  %v1463_v57 = vld [vmem:[%s5100_s6 + $0x190] sm:$0xff]  ;;  %v1477_v61 = vld [vmem:[%s5100_s6 + $0x200] sm:$0xff]  ;;  %v1444_v47 = vld [vmem:[%s5100_s6 + $0xf8] sm:$0xff] }
 0x2da   :  { %v1504_v29 = vpack.c.bf16 %v1428_v6, %v1427_v17  ;;  %v1479_v55 = vld [vmem:[%s5100_s6 + $0x210] sm:$0xff]  ;;  %v1446_v9 = vld [vmem:[%s5100_s6 + $0x108] sm:$0xff]  ;;  %v1481_v33 = vld [vmem:[%s5100_s6 + $0x220] sm:$0xff] }
 0x2db   :  { %v1371_v19 = vadd.f32 %v1343_v26, %v1315_v31  ;;  %v1372_v18 = vadd.f32 %v1344_v35, %v1316_v5  ;;  %v1430_v26 = vld [vmem:[%s5100_s6 + $0x88] sm:$0xff]  ;;  %v1522_v35 = vpack.c.bf16 %v1464_v63, %v1463_v57  ;;  %v1465_v31 = vld [vmem:[%s5100_s6 + $0x1a0] sm:$0xff]  ;;  %v1483_v40 = vld [vmem:[%s5100_s6 + $0x230] sm:$0xff] }
 0x2dc   :  { %1679 = vmatpush1.bf16.msra.mxu0 %v1401_v62  ;;  %2352 = vmatpush1.bf16.msra.mxu1 %v1401_v62  ;;  %v1505_v45 = vpack.c.bf16 %v1430_v26, %v1429_v56  ;;  %v1466_v5 = vld [vmem:[%s5100_s6 + $0x1a8] sm:$0xff]  ;;  %v1431_v62 = vld [vmem:[%s5100_s6 + $0x90] sm:$0xff]  ;;  %v1484_v30 = vld [vmem:[%s5100_s6 + $0x238] sm:$0xff] }
 0x2dd   :  { %v1399_v27 = vpack.c.bf16 %v1373_v13, %v1371_v19  ;;  %v1400_v52 = vpack.c.bf16 %v1374_v53, %v1372_v18  ;;  %v1432_v13 = vld [vmem:[%s5100_s6 + $0x98] sm:$0xff]  ;;  %v1523_v53 = vpack.c.bf16 %v1466_v5, %v1465_v31  ;;  %v1467_v18 = vld [vmem:[%s5100_s6 + $0x1b0] sm:$0xff]  ;;  %v1532_v17 = vpack.c.bf16 %v1484_v30, %v1483_v40  ;;  %v1485_v6 = vld [vmem:[%s5100_s6 + $0x240] sm:$0xff] }
 0x2de   :  { %v1506_v19 = vpack.c.bf16 %v1432_v13, %v1431_v62  ;;  %v1524_v46 = vpack.c.bf16 %v1468_v16, %v1467_v18  ;;  %v1487_v57 = vld [vmem:[%s5100_s6 + $0x250] sm:$0xff]  ;;  %v1488_v63 = vld [vmem:[%s5100_s6 + $0x258] sm:$0xff]  ;;  %v1489_v26 = vld [vmem:[%s5100_s6 + $0x260] sm:$0xff] }
 0x2df   :  { %1680 = vmatprep.subr.bf16.mxu0 %v1400_v52  ;;  %2346 = vmatprep.subr.bf16.mxu1 %v1400_v52  ;;  %v1469_v52 = vld [vmem:[%s5100_s6 + $0x1c0] sm:$0xff]  ;;  %v1534_v56 = vpack.c.bf16 %v1488_v63, %v1487_v57  ;;  %v1491_v31 = vld [vmem:[%s5100_s6 + $0x270] sm:$0xff]  ;;  %v1492_v5 = vld [vmem:[%s5100_s6 + $0x278] sm:$0xff] }
 0x2e0   :  { %1681 = vmatpush1.bf16.msra.mxu0 %v1399_v27  ;;  %2353 = vmatpush1.bf16.msra.mxu1 %v1399_v27  ;;  %v1507_v27 = vpack.c.bf16 %v1434_v14, %v1433_v48  ;;  %v1536_v62 = vpack.c.bf16 %v1492_v5, %v1491_v31  ;;  %v1493_v13 = vld [vmem:[%s5100_s6 + $0x280] sm:$0xff]  ;;  %v1495_v18 = vld [vmem:[%s5100_s6 + $0x290] sm:$0xff]  ;;  %v1496_v16 = vld [vmem:[%s5100_s6 + $0x298] sm:$0xff] }
 0x2e1   :  { %v1538_v48 = vpack.c.bf16 %v1496_v16, %v1495_v18 }
 0x2e3   :  { %2315 = vmatmul.mubr.msk.bf16.vlgmr.msra.gmra.mxu1 %vm1539_vm2, %v1514_v25  ;;  %2298 = vmatmul.mubr.msk.bf16.vlgmr.msra.gmra.mxu0 %vm1539_vm2, %v1497_v0  ;;  %v1470_v25 = vld [vmem:[%s5100_s6 + $0x1c8] sm:$0xff]  ;;  %v1435_v0 = vld [vmem:[%s5100_s6 + $0xb0] sm:$0xff] }
 0x2e4   :  { %1878 = vmatprep.mubr.bf16.mxu1 %v2385_v54  ;;  %1708 = vmatprep.mubr.bf16.mxu0 %v2385_v54  ;;  %v1525_v50 = vpack.c.bf16 %v1470_v25, %v1469_v52  ;;  %v1508_v32 = vpack.c.bf16 %v1436_v4, %v1435_v0 }
 0x2eb   :  { %2316 = vmatmul.mubr.msk.bf16.gmra.mxu1 %vm1539_vm2, %v1515_v2  ;;  %2299 = vmatmul.mubr.msk.bf16.gmra.mxu0 %vm1539_vm2, %v1498_v20  ;;  %v1472_v2 = vld [vmem:[%s5100_s6 + $0x1d8] sm:$0xff]  ;;  %v1437_v20 = vld [vmem:[%s5100_s6 + $0xc0] sm:$0xff] }
 0x2ec   :  { %1888 = vmatprep.mubr.bf16.mxu1 %v2385_v54  ;;  %1718 = vmatprep.mubr.bf16.mxu0 %v2385_v54  ;;  %v1526_v15 = vpack.c.bf16 %v1472_v2, %v1471_v42  ;;  %v1509_v49 = vpack.c.bf16 %v1438_v38, %v1437_v20 }
 0x2f3   :  { %2317 = vmatmul.mubr.msk.bf16.gmra.mxu1 %vm1539_vm2, %v1516_v1  ;;  %2300 = vmatmul.mubr.msk.bf16.gmra.mxu0 %vm1539_vm2, %v1499_v59  ;;  %v1474_v1 = vld [vmem:[%s5100_s6 + $0x1e8] sm:$0xff]  ;;  %v1439_v59 = vld [vmem:[%s5100_s6 + $0xd0] sm:$0xff] }
 0x2f4   :  { %1898 = vmatprep.mubr.bf16.mxu1 %v2385_v54  ;;  %1728 = vmatprep.mubr.bf16.mxu0 %v2385_v54  ;;  %v1527_v43 = vpack.c.bf16 %v1474_v1, %v1473_v23  ;;  %v1510_v34 = vpack.c.bf16 %v1440_v41, %v1439_v59 }
 0x2fb   :  { %2318 = vmatmul.mubr.msk.bf16.gmra.mxu1 %vm1539_vm2, %v1517_v11  ;;  %2301 = vmatmul.mubr.msk.bf16.gmra.mxu0 %vm1539_vm2, %v1500_v39  ;;  %v1476_v11 = vld [vmem:[%s5100_s6 + $0x1f8] sm:$0xff]  ;;  %v1441_v39 = vld [vmem:[%s5100_s6 + $0xe0] sm:$0xff] }
 0x2fc   :  { %1908 = vmatprep.mubr.bf16.mxu1 %v2385_v54  ;;  %1738 = vmatprep.mubr.bf16.mxu0 %v2385_v54  ;;  %v1528_v12 = vpack.c.bf16 %v1476_v11, %v1475_v28  ;;  %v1511_v7 = vpack.c.bf16 %v1442_v21, %v1441_v39 }
 0x303   :  { %2319 = vmatmul.mubr.msk.bf16.gmra.mxu1 %vm1539_vm2, %v1518_v10  ;;  %2302 = vmatmul.mubr.msk.bf16.gmra.mxu0 %vm1539_vm2, %v1501_v60  ;;  %v1478_v10 = vld [vmem:[%s5100_s6 + $0x208] sm:$0xff]  ;;  %v1443_v60 = vld [vmem:[%s5100_s6 + $0xf0] sm:$0xff] }
 0x304   :  { %1918 = vmatprep.mubr.bf16.mxu1 %v2385_v54  ;;  %1748 = vmatprep.mubr.bf16.mxu0 %v2385_v54  ;;  %v1529_v44 = vpack.c.bf16 %v1478_v10, %v1477_v61  ;;  %v1512_v24 = vpack.c.bf16 %v1444_v47, %v1443_v60 }
 0x30b   :  { %2320 = vmatmul.mubr.msk.bf16.gmra.mxu1 %vm1539_vm2, %v1519_v3  ;;  %2303 = vmatmul.mubr.msk.bf16.gmra.mxu0 %vm1539_vm2, %v1502_v36  ;;  %v1480_v3 = vld [vmem:[%s5100_s6 + $0x218] sm:$0xff]  ;;  %v1445_v36 = vld [vmem:[%s5100_s6 + $0x100] sm:$0xff] }
 0x30c   :  { %1928 = vmatprep.mubr.bf16.mxu1 %v2385_v54  ;;  %1758 = vmatprep.mubr.bf16.mxu0 %v2385_v54  ;;  %v1530_v51 = vpack.c.bf16 %v1480_v3, %v1479_v55  ;;  %v1513_v58 = vpack.c.bf16 %v1446_v9, %v1445_v36 }
 0x313   :  { %2321 = vmatmul.mubr.msk.bf16.gmra.mxu1 %vm1539_vm2, %v1520_v22  ;;  %2304 = vmatmul.mubr.msk.bf16.gmra.mxu0 %vm1539_vm2, %v1503_v37  ;;  %v1482_v22 = vld [vmem:[%s5100_s6 + $0x228] sm:$0xff] }
 0x314   :  { %1938 = vmatprep.mubr.bf16.mxu1 %v2385_v54  ;;  %1768 = vmatprep.mubr.bf16.mxu0 %v2385_v54  ;;  %v1531_v37 = vpack.c.bf16 %v1482_v22, %v1481_v33 }
 0x31b   :  { %2322 = vmatmul.mubr.msk.bf16.gmra.mxu1 %vm1539_vm2, %v1521_v8  ;;  %2305 = vmatmul.mubr.msk.bf16.gmra.mxu0 %vm1539_vm2, %v1504_v29  ;;  %v1486_v8 = vld [vmem:[%s5100_s6 + $0x248] sm:$0xff] }
 0x31c   :  { %1948 = vmatprep.mubr.bf16.mxu1 %v2385_v54  ;;  %1778 = vmatprep.mubr.bf16.mxu0 %v2385_v54  ;;  %v1533_v29 = vpack.c.bf16 %v1486_v8, %v1485_v6 }
 0x323   :  { %2323 = vmatmul.mubr.msk.bf16.gmra.mxu1 %vm1539_vm2, %v1522_v35  ;;  %2306 = vmatmul.mubr.msk.bf16.gmra.mxu0 %vm1539_vm2, %v1505_v45  ;;  %v1490_v35 = vld [vmem:[%s5100_s6 + $0x268] sm:$0xff] }
 0x324   :  { %1958 = vmatprep.mubr.bf16.mxu1 %v2385_v54  ;;  %1788 = vmatprep.mubr.bf16.mxu0 %v2385_v54  ;;  %v1535_v45 = vpack.c.bf16 %v1490_v35, %v1489_v26 }
 0x32b   :  { %2324 = vmatmul.mubr.msk.bf16.gmra.mxu1 %vm1539_vm2, %v1523_v53  ;;  %2307 = vmatmul.mubr.msk.bf16.gmra.mxu0 %vm1539_vm2, %v1506_v19  ;;  %v1494_v53 = vld [vmem:[%s5100_s6 + $0x288] sm:$0xff] }
 0x32c   :  { %1968 = vmatprep.mubr.bf16.mxu1 %v2385_v54  ;;  %1798 = vmatprep.mubr.bf16.mxu0 %v2385_v54  ;;  %v1537_v19 = vpack.c.bf16 %v1494_v53, %v1493_v13 }
 0x333   :  { %2325 = vmatmul.mubr.msk.bf16.gmra.mxu1 %vm1539_vm2, %v1524_v46  ;;  %2308 = vmatmul.mubr.msk.bf16.gmra.mxu0 %vm1539_vm2, %v1507_v27 }
 0x334   :  { %1978 = vmatprep.mubr.bf16.mxu1 %v2385_v54  ;;  %1808 = vmatprep.mubr.bf16.mxu0 %v2385_v54 }
 0x33b   :  { %2326 = vmatmul.mubr.msk.bf16.gmra.mxu1 %vm1539_vm2, %v1525_v50  ;;  %2309 = vmatmul.mubr.msk.bf16.gmra.mxu0 %vm1539_vm2, %v1508_v32 }
 0x33c   :  { %1988 = vmatprep.mubr.bf16.mxu1 %v2385_v54  ;;  %1818 = vmatprep.mubr.bf16.mxu0 %v2385_v54 }
 0x343   :  { %2327 = vmatmul.mubr.msk.bf16.gmra.mxu1 %vm1539_vm2, %v1526_v15  ;;  %2310 = vmatmul.mubr.msk.bf16.gmra.mxu0 %vm1539_vm2, %v1509_v49 }
 0x344   :  { %1998 = vmatprep.mubr.bf16.mxu1 %v2385_v54  ;;  %1828 = vmatprep.mubr.bf16.mxu0 %v2385_v54 }
 0x34b   :  { %2328 = vmatmul.mubr.msk.bf16.gmra.mxu1 %vm1539_vm2, %v1527_v43  ;;  %2311 = vmatmul.mubr.msk.bf16.gmra.mxu0 %vm1539_vm2, %v1510_v34 }
 0x34c   :  { %2008 = vmatprep.mubr.bf16.mxu1 %v2385_v54  ;;  %1838 = vmatprep.mubr.bf16.mxu0 %v2385_v54 }
 0x353   :  { %2329 = vmatmul.mubr.msk.bf16.gmra.mxu1 %vm1539_vm2, %v1528_v12  ;;  %2312 = vmatmul.mubr.msk.bf16.gmra.mxu0 %vm1539_vm2, %v1511_v7 }
 0x354   :  { %2018 = vmatprep.mubr.bf16.mxu1 %v2385_v54  ;;  %1848 = vmatprep.mubr.bf16.mxu0 %v2385_v54 }
 0x35b   :  { %2330 = vmatmul.mubr.msk.bf16.gmra.mxu1 %vm1539_vm2, %v1529_v44  ;;  %2313 = vmatmul.mubr.msk.bf16.gmra.mxu0 %vm1539_vm2, %v1512_v24 }
 0x35c   :  { %2028 = vmatprep.mubr.bf16.mxu1 %v2385_v54  ;;  %1858 = vmatprep.mubr.bf16.mxu0 %v2385_v54 }
 0x363   :  { %2331 = vmatmul.mubr.msk.bf16.gmra.mxu1 %vm1539_vm2, %v1530_v51  ;;  %2314 = vmatmul.mubr.msk.bf16.gmra.mxu0 %vm1539_vm2, %v1513_v58 }
 0x364   :  { %2038 = vmatprep.mubr.bf16.mxu1 %v2385_v54 }
 0x36b   :  { %2332 = vmatmul.mubr.msk.bf16.gmra.mxu1 %vm1539_vm2, %v1531_v37 }
 0x36c   :  { %2048 = vmatprep.mubr.bf16.mxu1 %v2385_v54 }
 0x373   :  { %2333 = vmatmul.mubr.msk.bf16.gmra.mxu1 %vm1539_vm2, %v1532_v17 }
 0x374   :  { %2058 = vmatprep.mubr.bf16.mxu1 %v2385_v54 }
 0x37b   :  { %2334 = vmatmul.mubr.msk.bf16.gmra.mxu1 %vm1539_vm2, %v1533_v29 }
 0x37c   :  { %2068 = vmatprep.mubr.bf16.mxu1 %v2385_v54 }
 0x383   :  { %2335 = vmatmul.mubr.msk.bf16.gmra.mxu1 %vm1539_vm2, %v1534_v56 }
 0x384   :  { %2078 = vmatprep.mubr.bf16.mxu1 %v2385_v54 }
 0x38b   :  { %2336 = vmatmul.mubr.msk.bf16.gmra.mxu1 %vm1539_vm2, %v1535_v45 }
 0x38c   :  { %2088 = vmatprep.mubr.bf16.mxu1 %v2385_v54 }
 0x393   :  { %2337 = vmatmul.mubr.msk.bf16.gmra.mxu1 %vm1539_vm2, %v1536_v62 }
 0x394   :  { %2098 = vmatprep.mubr.bf16.mxu1 %v2385_v54 }
 0x39b   :  { %2338 = vmatmul.mubr.msk.bf16.gmra.mxu1 %vm1539_vm2, %v1537_v19 }
 0x39c   :  { %2108 = vmatprep.mubr.bf16.mxu1 %v2385_v54 }
 0x3a3   :  { %v1870_v14 = vpop.f32.mrf.mxu1  ;;  %2339 = vmatmul.mubr.msk.bf16.gmra.mxu1 %vm1539_vm2, %v1538_v48  ;;  %v1700_v46 = vpop.f32.mrf.mxu0 }
 0x3a4   :  { %2187 = vst [vmem:[%s5101_s7 + $0x220] sm:$0xff] %v1870_v14  ;;  %2119 = vst [vmem:[%s5101_s7] sm:$0xff] %v1700_v46 }
 0x3a5   :  { %v1872_v54 = vpop.f32.mrf.mxu1  ;;  %v1702_v27 = vpop.f32.mrf.mxu0 }
 0x3a6   :  { %2188 = vst.msk [vmem:[%s5101_s7 + $0x228] sm:$0xff] %vm852_vm1, %v1872_v54  ;;  %2120 = vst.msk [vmem:[%s5101_s7 + $0x8] sm:$0xff] %vm852_vm1, %v1702_v27 }
 0x3a7   :  { %v1874_v52 = vpop.f32.mrf.mxu1  ;;  %v1704_v25 = vpop.f32.mrf.mxu0 }
 0x3a8   :  { %2189 = vst [vmem:[%s5101_s7 + $0x230] sm:$0xff] %v1874_v52  ;;  %2121 = vst [vmem:[%s5101_s7 + $0x10] sm:$0xff] %v1704_v25 }
 0x3a9   :  { %v1876_v0 = vpop.f32.mrf.mxu1  ;;  %v1706_v4 = vpop.f32.mrf.mxu0 }
 0x3aa   :  { %2190 = vst.msk [vmem:[%s5101_s7 + $0x238] sm:$0xff] %vm852_vm1, %v1876_v0  ;;  %2122 = vst.msk [vmem:[%s5101_s7 + $0x18] sm:$0xff] %vm852_vm1, %v1706_v4 }
 0x3ab   :  { %v1880_v50 = vpop.f32.mrf.mxu1  ;;  %v1710_v32 = vpop.f32.mrf.mxu0 }
 0x3ac   :  { %2191 = vst [vmem:[%s5101_s7 + $0x240] sm:$0xff] %v1880_v50  ;;  %2123 = vst [vmem:[%s5101_s7 + $0x20] sm:$0xff] %v1710_v32 }
 0x3ad   :  { %v1882_v42 = vpop.f32.mrf.mxu1  ;;  %v1712_v2 = vpop.f32.mrf.mxu0 }
 0x3ae   :  { %2192 = vst.msk [vmem:[%s5101_s7 + $0x248] sm:$0xff] %vm852_vm1, %v1882_v42  ;;  %2124 = vst.msk [vmem:[%s5101_s7 + $0x28] sm:$0xff] %vm852_vm1, %v1712_v2 }
 0x3af   :  { %v1884_v20 = vpop.f32.mrf.mxu1  ;;  %v1714_v38 = vpop.f32.mrf.mxu0 }
 0x3b0   :  { %2193 = vst [vmem:[%s5101_s7 + $0x250] sm:$0xff] %v1884_v20  ;;  %2125 = vst [vmem:[%s5101_s7 + $0x30] sm:$0xff] %v1714_v38 }
 0x3b1   :  { %v1886_v15 = vpop.f32.mrf.mxu1  ;;  %v1716_v49 = vpop.f32.mrf.mxu0 }
 0x3b2   :  { %2194 = vst.msk [vmem:[%s5101_s7 + $0x258] sm:$0xff] %vm852_vm1, %v1886_v15  ;;  %2126 = vst.msk [vmem:[%s5101_s7 + $0x38] sm:$0xff] %vm852_vm1, %v1716_v49 }
 0x3b3   :  { %v1890_v23 = vpop.f32.mrf.mxu1  ;;  %v1720_v1 = vpop.f32.mrf.mxu0 }
 0x3b4   :  { %2195 = vst [vmem:[%s5101_s7 + $0x260] sm:$0xff] %v1890_v23  ;;  %2127 = vst [vmem:[%s5101_s7 + $0x40] sm:$0xff] %v1720_v1 }
 0x3b5   :  { %v1892_v59 = vpop.f32.mrf.mxu1  ;;  %v1722_v41 = vpop.f32.mrf.mxu0 }
 0x3b6   :  { %2196 = vst.msk [vmem:[%s5101_s7 + $0x268] sm:$0xff] %vm852_vm1, %v1892_v59  ;;  %2128 = vst.msk [vmem:[%s5101_s7 + $0x48] sm:$0xff] %vm852_vm1, %v1722_v41 }
 0x3b7   :  { %v1894_v43 = vpop.f32.mrf.mxu1  ;;  %v1724_v34 = vpop.f32.mrf.mxu0 }
 0x3b8   :  { %2197 = vst [vmem:[%s5101_s7 + $0x270] sm:$0xff] %v1894_v43  ;;  %2129 = vst [vmem:[%s5101_s7 + $0x50] sm:$0xff] %v1724_v34 }
 0x3b9   :  { %v1896_v28 = vpop.f32.mrf.mxu1  ;;  %v1726_v11 = vpop.f32.mrf.mxu0 }
 0x3ba   :  { %2198 = vst.msk [vmem:[%s5101_s7 + $0x278] sm:$0xff] %vm852_vm1, %v1896_v28  ;;  %2130 = vst.msk [vmem:[%s5101_s7 + $0x58] sm:$0xff] %vm852_vm1, %v1726_v11 }
 0x3bb   :  { %v1900_v39 = vpop.f32.mrf.mxu1  ;;  %v1730_v21 = vpop.f32.mrf.mxu0 }
 0x3bc   :  { %2199 = vst [vmem:[%s5101_s7 + $0x280] sm:$0xff] %v1900_v39  ;;  %2131 = vst [vmem:[%s5101_s7 + $0x60] sm:$0xff] %v1730_v21 }
 0x3bd   :  { %v1902_v12 = vpop.f32.mrf.mxu1  ;;  %v1732_v7 = vpop.f32.mrf.mxu0 }
 0x3be   :  { %2200 = vst.msk [vmem:[%s5101_s7 + $0x288] sm:$0xff] %vm852_vm1, %v1902_v12  ;;  %2132 = vst.msk [vmem:[%s5101_s7 + $0x68] sm:$0xff] %vm852_vm1, %v1732_v7 }
 0x3bf   :  { %v1904_v61 = vpop.f32.mrf.mxu1  ;;  %v1734_v10 = vpop.f32.mrf.mxu0 }
 0x3c0   :  { %2201 = vst [vmem:[%s5101_s7 + $0x290] sm:$0xff] %v1904_v61  ;;  %2133 = vst [vmem:[%s5101_s7 + $0x70] sm:$0xff] %v1734_v10 }
 0x3c1   :  { %v1906_v60 = vpop.f32.mrf.mxu1  ;;  %v1736_v47 = vpop.f32.mrf.mxu0 }
 0x3c2   :  { %2202 = vst.msk [vmem:[%s5101_s7 + $0x298] sm:$0xff] %vm852_vm1, %v1906_v60  ;;  %2134 = vst.msk [vmem:[%s5101_s7 + $0x78] sm:$0xff] %vm852_vm1, %v1736_v47 }
 0x3c3   :  { %v1910_v44 = vpop.f32.mrf.mxu1  ;;  %v1740_v24 = vpop.f32.mrf.mxu0 }
 0x3c4   :  { %2203 = vst [vmem:[%s5101_s7 + $0x2a0] sm:$0xff] %v1910_v44  ;;  %2135 = vst [vmem:[%s5101_s7 + $0x80] sm:$0xff] %v1740_v24 }
 0x3c5   :  { %v1912_v55 = vpop.f32.mrf.mxu1  ;;  %v1742_v3 = vpop.f32.mrf.mxu0 }
 0x3c6   :  { %2204 = vst.msk [vmem:[%s5101_s7 + $0x2a8] sm:$0xff] %vm852_vm1, %v1912_v55  ;;  %2136 = vst.msk [vmem:[%s5101_s7 + $0x88] sm:$0xff] %vm852_vm1, %v1742_v3 }
 0x3c7   :  { %v1914_v36 = vpop.f32.mrf.mxu1  ;;  %v1744_v9 = vpop.f32.mrf.mxu0 }
 0x3c8   :  { %2205 = vst [vmem:[%s5101_s7 + $0x2b0] sm:$0xff] %v1914_v36  ;;  %2137 = vst [vmem:[%s5101_s7 + $0x90] sm:$0xff] %v1744_v9 }
 0x3c9   :  { %v1916_v51 = vpop.f32.mrf.mxu1  ;;  %v1746_v58 = vpop.f32.mrf.mxu0 }
 0x3ca   :  { %2206 = vst.msk [vmem:[%s5101_s7 + $0x2b8] sm:$0xff] %vm852_vm1, %v1916_v51  ;;  %2138 = vst.msk [vmem:[%s5101_s7 + $0x98] sm:$0xff] %vm852_vm1, %v1746_v58 }
 0x3cb   :  { %v1920_v33 = vpop.f32.mrf.mxu1  ;;  %v1750_v22 = vpop.f32.mrf.mxu0 }
 0x3cc   :  { %2207 = vst [vmem:[%s5101_s7 + $0x2c0] sm:$0xff] %v1920_v33  ;;  %2139 = vst [vmem:[%s5101_s7 + $0xa0] sm:$0xff] %v1750_v22 }
 0x3cd   :  { %v1922_v37 = vpop.f32.mrf.mxu1  ;;  %v1752_v40 = vpop.f32.mrf.mxu0 }
 0x3ce   :  { %2208 = vst.msk [vmem:[%s5101_s7 + $0x2c8] sm:$0xff] %vm852_vm1, %v1922_v37  ;;  %2140 = vst.msk [vmem:[%s5101_s7 + $0xa8] sm:$0xff] %vm852_vm1, %v1752_v40 }
 0x3cf   :  { %v1924_v30 = vpop.f32.mrf.mxu1  ;;  %v1754_v17 = vpop.f32.mrf.mxu0 }
 0x3d0   :  { %2209 = vst [vmem:[%s5101_s7 + $0x2d0] sm:$0xff] %v1924_v30  ;;  %2141 = vst [vmem:[%s5101_s7 + $0xb0] sm:$0xff] %v1754_v17 }
 0x3d1   :  { %v1926_v6 = vpop.f32.mrf.mxu1  ;;  %v1756_v8 = vpop.f32.mrf.mxu0 }
 0x3d2   :  { %2210 = vst.msk [vmem:[%s5101_s7 + $0x2d8] sm:$0xff] %vm852_vm1, %v1926_v6  ;;  %2142 = vst.msk [vmem:[%s5101_s7 + $0xb8] sm:$0xff] %vm852_vm1, %v1756_v8 }
 0x3d3   :  { %v1930_v29 = vpop.f32.mrf.mxu1  ;;  %v1760_v57 = vpop.f32.mrf.mxu0 }
 0x3d4   :  { %2211 = vst [vmem:[%s5101_s7 + $0x2e0] sm:$0xff] %v1930_v29  ;;  %2143 = vst [vmem:[%s5101_s7 + $0xc0] sm:$0xff] %v1760_v57 }
 0x3d5   :  { %v1932_v63 = vpop.f32.mrf.mxu1  ;;  %v1762_v56 = vpop.f32.mrf.mxu0 }
 0x3d6   :  { %2212 = vst.msk [vmem:[%s5101_s7 + $0x2e8] sm:$0xff] %vm852_vm1, %v1932_v63  ;;  %2144 = vst.msk [vmem:[%s5101_s7 + $0xc8] sm:$0xff] %vm852_vm1, %v1762_v56 }
 0x3d7   :  { %v1934_v26 = vpop.f32.mrf.mxu1  ;;  %v1764_v35 = vpop.f32.mrf.mxu0 }
 0x3d8   :  { %2213 = vst [vmem:[%s5101_s7 + $0x2f0] sm:$0xff] %v1934_v26  ;;  %2145 = vst [vmem:[%s5101_s7 + $0xd0] sm:$0xff] %v1764_v35 }
 0x3d9   :  { %v1936_v45 = vpop.f32.mrf.mxu1  ;;  %v1766_v31 = vpop.f32.mrf.mxu0 }
 0x3da   :  { %2214 = vst.msk [vmem:[%s5101_s7 + $0x2f8] sm:$0xff] %vm852_vm1, %v1936_v45  ;;  %2146 = vst.msk [vmem:[%s5101_s7 + $0xd8] sm:$0xff] %vm852_vm1, %v1766_v31 }
 0x3db   :  { %v1940_v5 = vpop.f32.mrf.mxu1  ;;  %v1770_v62 = vpop.f32.mrf.mxu0 }
 0x3dc   :  { %2215 = vst [vmem:[%s5101_s7 + $0x300] sm:$0xff] %v1940_v5  ;;  %2147 = vst [vmem:[%s5101_s7 + $0xe0] sm:$0xff] %v1770_v62 }
 0x3dd   :  { %v1942_v13 = vpop.f32.mrf.mxu1  ;;  %v1772_v53 = vpop.f32.mrf.mxu0 }
 0x3de   :  { %2216 = vst.msk [vmem:[%s5101_s7 + $0x308] sm:$0xff] %vm852_vm1, %v1942_v13  ;;  %2148 = vst.msk [vmem:[%s5101_s7 + $0xe8] sm:$0xff] %vm852_vm1, %v1772_v53 }
 0x3df   :  { %v1944_v19 = vpop.f32.mrf.mxu1  ;;  %v1774_v18 = vpop.f32.mrf.mxu0 }
 0x3e0   :  { %2217 = vst [vmem:[%s5101_s7 + $0x310] sm:$0xff] %v1944_v19  ;;  %2149 = vst [vmem:[%s5101_s7 + $0xf0] sm:$0xff] %v1774_v18 }
 0x3e1   :  { %v1946_v16 = vpop.f32.mrf.mxu1  ;;  %v1776_v48 = vpop.f32.mrf.mxu0 }
 0x3e2   :  { %2218 = vst.msk [vmem:[%s5101_s7 + $0x318] sm:$0xff] %vm852_vm1, %v1946_v16  ;;  %2150 = vst.msk [vmem:[%s5101_s7 + $0xf8] sm:$0xff] %vm852_vm1, %v1776_v48 }
 0x3e3   :  { %v1950_v14 = vpop.f32.mrf.mxu1  ;;  %v1780_v46 = vpop.f32.mrf.mxu0 }
 0x3e4   :  { %2219 = vst [vmem:[%s5101_s7 + $0x320] sm:$0xff] %v1950_v14  ;;  %2151 = vst [vmem:[%s5101_s7 + $0x100] sm:$0xff] %v1780_v46 }
 0x3e5   :  { %v1952_v54 = vpop.f32.mrf.mxu1  ;;  %v1782_v27 = vpop.f32.mrf.mxu0 }
 0x3e6   :  { %2220 = vst.msk [vmem:[%s5101_s7 + $0x328] sm:$0xff] %vm852_vm1, %v1952_v54  ;;  %2152 = vst.msk [vmem:[%s5101_s7 + $0x108] sm:$0xff] %vm852_vm1, %v1782_v27 }
 0x3e7   :  { %v1954_v52 = vpop.f32.mrf.mxu1  ;;  %v1784_v25 = vpop.f32.mrf.mxu0 }
 0x3e8   :  { %2221 = vst [vmem:[%s5101_s7 + $0x330] sm:$0xff] %v1954_v52  ;;  %2153 = vst [vmem:[%s5101_s7 + $0x110] sm:$0xff] %v1784_v25 }
 0x3e9   :  { %v1956_v0 = vpop.f32.mrf.mxu1  ;;  %v1786_v4 = vpop.f32.mrf.mxu0 }
 0x3ea   :  { %2222 = vst.msk [vmem:[%s5101_s7 + $0x338] sm:$0xff] %vm852_vm1, %v1956_v0  ;;  %2154 = vst.msk [vmem:[%s5101_s7 + $0x118] sm:$0xff] %vm852_vm1, %v1786_v4 }
 0x3eb   :  { %v1960_v50 = vpop.f32.mrf.mxu1  ;;  %v1790_v32 = vpop.f32.mrf.mxu0 }
 0x3ec   :  { %2223 = vst [vmem:[%s5101_s7 + $0x340] sm:$0xff] %v1960_v50  ;;  %2155 = vst [vmem:[%s5101_s7 + $0x120] sm:$0xff] %v1790_v32 }
 0x3ed   :  { %v1962_v42 = vpop.f32.mrf.mxu1  ;;  %v1792_v2 = vpop.f32.mrf.mxu0 }
 0x3ee   :  { %2224 = vst.msk [vmem:[%s5101_s7 + $0x348] sm:$0xff] %vm852_vm1, %v1962_v42  ;;  %2156 = vst.msk [vmem:[%s5101_s7 + $0x128] sm:$0xff] %vm852_vm1, %v1792_v2 }
 0x3ef   :  { %v1964_v20 = vpop.f32.mrf.mxu1  ;;  %v1794_v38 = vpop.f32.mrf.mxu0 }
 0x3f0   :  { %2225 = vst [vmem:[%s5101_s7 + $0x350] sm:$0xff] %v1964_v20  ;;  %2157 = vst [vmem:[%s5101_s7 + $0x130] sm:$0xff] %v1794_v38 }
 0x3f1   :  { %v1966_v15 = vpop.f32.mrf.mxu1  ;;  %v1796_v49 = vpop.f32.mrf.mxu0 }
 0x3f2   :  { %2226 = vst.msk [vmem:[%s5101_s7 + $0x358] sm:$0xff] %vm852_vm1, %v1966_v15  ;;  %2158 = vst.msk [vmem:[%s5101_s7 + $0x138] sm:$0xff] %vm852_vm1, %v1796_v49 }
 0x3f3   :  { %v1970_v23 = vpop.f32.mrf.mxu1  ;;  %v1800_v1 = vpop.f32.mrf.mxu0 }
 0x3f4   :  { %2227 = vst [vmem:[%s5101_s7 + $0x360] sm:$0xff] %v1970_v23  ;;  %2159 = vst [vmem:[%s5101_s7 + $0x140] sm:$0xff] %v1800_v1 }
 0x3f5   :  { %v1972_v59 = vpop.f32.mrf.mxu1  ;;  %v1802_v41 = vpop.f32.mrf.mxu0 }
 0x3f6   :  { %2228 = vst.msk [vmem:[%s5101_s7 + $0x368] sm:$0xff] %vm852_vm1, %v1972_v59  ;;  %2160 = vst.msk [vmem:[%s5101_s7 + $0x148] sm:$0xff] %vm852_vm1, %v1802_v41 }
 0x3f7   :  { %v1974_v43 = vpop.f32.mrf.mxu1  ;;  %v1804_v34 = vpop.f32.mrf.mxu0 }
 0x3f8   :  { %2229 = vst [vmem:[%s5101_s7 + $0x370] sm:$0xff] %v1974_v43  ;;  %2161 = vst [vmem:[%s5101_s7 + $0x150] sm:$0xff] %v1804_v34 }
 0x3f9   :  { %v1976_v28 = vpop.f32.mrf.mxu1  ;;  %v1806_v11 = vpop.f32.mrf.mxu0 }
 0x3fa   :  { %2230 = vst.msk [vmem:[%s5101_s7 + $0x378] sm:$0xff] %vm852_vm1, %v1976_v28  ;;  %2162 = vst.msk [vmem:[%s5101_s7 + $0x158] sm:$0xff] %vm852_vm1, %v1806_v11 }
 0x3fb   :  { %v1980_v39 = vpop.f32.mrf.mxu1  ;;  %v1810_v21 = vpop.f32.mrf.mxu0 }
 0x3fc   :  { %2231 = vst [vmem:[%s5101_s7 + $0x380] sm:$0xff] %v1980_v39  ;;  %2163 = vst [vmem:[%s5101_s7 + $0x160] sm:$0xff] %v1810_v21 }
 0x3fd   :  { %v1982_v12 = vpop.f32.mrf.mxu1  ;;  %v1812_v7 = vpop.f32.mrf.mxu0 }
 0x3fe   :  { %2232 = vst.msk [vmem:[%s5101_s7 + $0x388] sm:$0xff] %vm852_vm1, %v1982_v12  ;;  %2164 = vst.msk [vmem:[%s5101_s7 + $0x168] sm:$0xff] %vm852_vm1, %v1812_v7 }
 0x3ff   :  { %v1984_v61 = vpop.f32.mrf.mxu1  ;;  %v1814_v10 = vpop.f32.mrf.mxu0 }
 0x400   :  { %2233 = vst [vmem:[%s5101_s7 + $0x390] sm:$0xff] %v1984_v61  ;;  %2165 = vst [vmem:[%s5101_s7 + $0x170] sm:$0xff] %v1814_v10 }
 0x401   :  { %v1986_v60 = vpop.f32.mrf.mxu1  ;;  %v1816_v47 = vpop.f32.mrf.mxu0 }
 0x402   :  { %2234 = vst.msk [vmem:[%s5101_s7 + $0x398] sm:$0xff] %vm852_vm1, %v1986_v60  ;;  %2166 = vst.msk [vmem:[%s5101_s7 + $0x178] sm:$0xff] %vm852_vm1, %v1816_v47 }
 0x403   :  { %v1990_v44 = vpop.f32.mrf.mxu1  ;;  %v1820_v24 = vpop.f32.mrf.mxu0 }
 0x404   :  { %2235 = vst [vmem:[%s5101_s7 + $0x3a0] sm:$0xff] %v1990_v44  ;;  %2167 = vst [vmem:[%s5101_s7 + $0x180] sm:$0xff] %v1820_v24 }
 0x405   :  { %v1992_v55 = vpop.f32.mrf.mxu1  ;;  %v1822_v3 = vpop.f32.mrf.mxu0 }
 0x406   :  { %2236 = vst.msk [vmem:[%s5101_s7 + $0x3a8] sm:$0xff] %vm852_vm1, %v1992_v55  ;;  %2168 = vst.msk [vmem:[%s5101_s7 + $0x188] sm:$0xff] %vm852_vm1, %v1822_v3 }
 0x407   :  { %v1994_v36 = vpop.f32.mrf.mxu1  ;;  %v1824_v9 = vpop.f32.mrf.mxu0 }
 0x408   :  { %2237 = vst [vmem:[%s5101_s7 + $0x3b0] sm:$0xff] %v1994_v36  ;;  %2169 = vst [vmem:[%s5101_s7 + $0x190] sm:$0xff] %v1824_v9 }
 0x409   :  { %v1996_v51 = vpop.f32.mrf.mxu1  ;;  %v1826_v58 = vpop.f32.mrf.mxu0 }
 0x40a   :  { %2238 = vst.msk [vmem:[%s5101_s7 + $0x3b8] sm:$0xff] %vm852_vm1, %v1996_v51  ;;  %2170 = vst.msk [vmem:[%s5101_s7 + $0x198] sm:$0xff] %vm852_vm1, %v1826_v58 }
 0x40b   :  { %v2000_v33 = vpop.f32.mrf.mxu1  ;;  %v1830_v22 = vpop.f32.mrf.mxu0 }
 0x40c   :  { %2239 = vst [vmem:[%s5101_s7 + $0x3c0] sm:$0xff] %v2000_v33  ;;  %2171 = vst [vmem:[%s5101_s7 + $0x1a0] sm:$0xff] %v1830_v22 }
 0x40d   :  { %v2002_v37 = vpop.f32.mrf.mxu1  ;;  %v1832_v40 = vpop.f32.mrf.mxu0 }
 0x40e   :  { %2240 = vst.msk [vmem:[%s5101_s7 + $0x3c8] sm:$0xff] %vm852_vm1, %v2002_v37  ;;  %2172 = vst.msk [vmem:[%s5101_s7 + $0x1a8] sm:$0xff] %vm852_vm1, %v1832_v40 }
 0x40f   :  { %v2004_v30 = vpop.f32.mrf.mxu1  ;;  %v1834_v17 = vpop.f32.mrf.mxu0 }
 0x410   :  { %2241 = vst [vmem:[%s5101_s7 + $0x3d0] sm:$0xff] %v2004_v30  ;;  %2173 = vst [vmem:[%s5101_s7 + $0x1b0] sm:$0xff] %v1834_v17 }
 0x411   :  { %v2006_v6 = vpop.f32.mrf.mxu1  ;;  %v1836_v8 = vpop.f32.mrf.mxu0 }
 0x412   :  { %2242 = vst.msk [vmem:[%s5101_s7 + $0x3d8] sm:$0xff] %vm852_vm1, %v2006_v6  ;;  %2174 = vst.msk [vmem:[%s5101_s7 + $0x1b8] sm:$0xff] %vm852_vm1, %v1836_v8 }
 0x413   :  { %v2010_v29 = vpop.f32.mrf.mxu1  ;;  %v1840_v57 = vpop.f32.mrf.mxu0 }
 0x414   :  { %2243 = vst [vmem:[%s5101_s7 + $0x3e0] sm:$0xff] %v2010_v29  ;;  %2175 = vst [vmem:[%s5101_s7 + $0x1c0] sm:$0xff] %v1840_v57 }
 0x415   :  { %v2012_v63 = vpop.f32.mrf.mxu1  ;;  %v1842_v56 = vpop.f32.mrf.mxu0 }
 0x416   :  { %2244 = vst.msk [vmem:[%s5101_s7 + $0x3e8] sm:$0xff] %vm852_vm1, %v2012_v63  ;;  %2176 = vst.msk [vmem:[%s5101_s7 + $0x1c8] sm:$0xff] %vm852_vm1, %v1842_v56 }
 0x417   :  { %v2014_v26 = vpop.f32.mrf.mxu1  ;;  %v1844_v35 = vpop.f32.mrf.mxu0 }
 0x418   :  { %2245 = vst [vmem:[%s5101_s7 + $0x3f0] sm:$0xff] %v2014_v26  ;;  %2177 = vst [vmem:[%s5101_s7 + $0x1d0] sm:$0xff] %v1844_v35 }
 0x419   :  { %v2016_v45 = vpop.f32.mrf.mxu1  ;;  %v1846_v31 = vpop.f32.mrf.mxu0 }
 0x41a   :  { %2246 = vst.msk [vmem:[%s5101_s7 + $0x3f8] sm:$0xff] %vm852_vm1, %v2016_v45  ;;  %2178 = vst.msk [vmem:[%s5101_s7 + $0x1d8] sm:$0xff] %vm852_vm1, %v1846_v31 }
 0x41b   :  { %v2020_v5 = vpop.f32.mrf.mxu1  ;;  %v1850_v62 = vpop.f32.mrf.mxu0 }
 0x41c   :  { %2247 = vst [vmem:[%s5101_s7 + $0x400] sm:$0xff] %v2020_v5  ;;  %2179 = vst [vmem:[%s5101_s7 + $0x1e0] sm:$0xff] %v1850_v62 }
 0x41d   :  { %v2022_v13 = vpop.f32.mrf.mxu1  ;;  %v1852_v53 = vpop.f32.mrf.mxu0 }
 0x41e   :  { %2248 = vst.msk [vmem:[%s5101_s7 + $0x408] sm:$0xff] %vm852_vm1, %v2022_v13  ;;  %2180 = vst.msk [vmem:[%s5101_s7 + $0x1e8] sm:$0xff] %vm852_vm1, %v1852_v53 }
 0x41f   :  { %v2024_v19 = vpop.f32.mrf.mxu1  ;;  %v1854_v18 = vpop.f32.mrf.mxu0 }
 0x420   :  { %2249 = vst [vmem:[%s5101_s7 + $0x410] sm:$0xff] %v2024_v19  ;;  %2181 = vst [vmem:[%s5101_s7 + $0x1f0] sm:$0xff] %v1854_v18 }
 0x421   :  { %v2026_v16 = vpop.f32.mrf.mxu1  ;;  %v1856_v48 = vpop.f32.mrf.mxu0 }
 0x422   :  { %2250 = vst.msk [vmem:[%s5101_s7 + $0x418] sm:$0xff] %vm852_vm1, %v2026_v16  ;;  %2182 = vst.msk [vmem:[%s5101_s7 + $0x1f8] sm:$0xff] %vm852_vm1, %v1856_v48 }
 0x423   :  { %v2030_v14 = vpop.f32.mrf.mxu1  ;;  %v1860_v46 = vpop.f32.mrf.mxu0 }
 0x424   :  { %2251 = vst [vmem:[%s5101_s7 + $0x420] sm:$0xff] %v2030_v14  ;;  %2183 = vst [vmem:[%s5101_s7 + $0x200] sm:$0xff] %v1860_v46 }
 0x425   :  { %v2032_v54 = vpop.f32.mrf.mxu1  ;;  %v1862_v27 = vpop.f32.mrf.mxu0 }
 0x426   :  { %2252 = vst.msk [vmem:[%s5101_s7 + $0x428] sm:$0xff] %vm852_vm1, %v2032_v54  ;;  %2184 = vst.msk [vmem:[%s5101_s7 + $0x208] sm:$0xff] %vm852_vm1, %v1862_v27 }
 0x427   :  { %v2034_v52 = vpop.f32.mrf.mxu1  ;;  %v1864_v25 = vpop.f32.mrf.mxu0 }
 0x428   :  { %2253 = vst [vmem:[%s5101_s7 + $0x430] sm:$0xff] %v2034_v52  ;;  %2185 = vst [vmem:[%s5101_s7 + $0x210] sm:$0xff] %v1864_v25 }
 0x429   :  { %v2036_v0 = vpop.f32.mrf.mxu1  ;;  %v1866_v4 = vpop.f32.mrf.mxu0 }
 0x42a   :  { %2254 = vst.msk [vmem:[%s5101_s7 + $0x438] sm:$0xff] %vm852_vm1, %v2036_v0  ;;  %2186 = vst.msk [vmem:[%s5101_s7 + $0x218] sm:$0xff] %vm852_vm1, %v1866_v4 }
 0x42b   :  { %v2040_v50 = vpop.f32.mrf.mxu1 }
 0x42c   :  { %2255 = vst [vmem:[%s5101_s7 + $0x440] sm:$0xff] %v2040_v50 }
 0x42d   :  { %v2042_v32 = vpop.f32.mrf.mxu1 }
 0x42e   :  { %2256 = vst.msk [vmem:[%s5101_s7 + $0x448] sm:$0xff] %vm852_vm1, %v2042_v32 }
 0x42f   :  { %v2044_v42 = vpop.f32.mrf.mxu1 }
 0x430   :  { %2257 = vst [vmem:[%s5101_s7 + $0x450] sm:$0xff] %v2044_v42 }
 0x431   :  { %v2046_v2 = vpop.f32.mrf.mxu1 }
 0x432   :  { %2258 = vst.msk [vmem:[%s5101_s7 + $0x458] sm:$0xff] %vm852_vm1, %v2046_v2 }
 0x433   :  { %v2050_v20 = vpop.f32.mrf.mxu1 }
 0x434   :  { %2259 = vst [vmem:[%s5101_s7 + $0x460] sm:$0xff] %v2050_v20 }
 0x435   :  { %v2052_v38 = vpop.f32.mrf.mxu1 }
 0x436   :  { %2260 = vst.msk [vmem:[%s5101_s7 + $0x468] sm:$0xff] %vm852_vm1, %v2052_v38 }
 0x437   :  { %v2054_v15 = vpop.f32.mrf.mxu1 }
 0x438   :  { %2261 = vst [vmem:[%s5101_s7 + $0x470] sm:$0xff] %v2054_v15 }
 0x439   :  { %v2056_v49 = vpop.f32.mrf.mxu1 }
 0x43a   :  { %2262 = vst.msk [vmem:[%s5101_s7 + $0x478] sm:$0xff] %vm852_vm1, %v2056_v49 }
 0x43b   :  { %v2060_v23 = vpop.f32.mrf.mxu1 }
 0x43c   :  { %2263 = vst [vmem:[%s5101_s7 + $0x480] sm:$0xff] %v2060_v23 }
 0x43d   :  { %v2062_v1 = vpop.f32.mrf.mxu1 }
 0x43e   :  { %2264 = vst.msk [vmem:[%s5101_s7 + $0x488] sm:$0xff] %vm852_vm1, %v2062_v1 }
 0x43f   :  { %v2064_v59 = vpop.f32.mrf.mxu1 }
 0x440   :  { %2265 = vst [vmem:[%s5101_s7 + $0x490] sm:$0xff] %v2064_v59 }
 0x441   :  { %v2066_v41 = vpop.f32.mrf.mxu1 }
 0x442   :  { %2266 = vst.msk [vmem:[%s5101_s7 + $0x498] sm:$0xff] %vm852_vm1, %v2066_v41 }
 0x443   :  { %v2070_v43 = vpop.f32.mrf.mxu1 }
 0x444   :  { %2267 = vst [vmem:[%s5101_s7 + $0x4a0] sm:$0xff] %v2070_v43 }
 0x445   :  { %v2072_v34 = vpop.f32.mrf.mxu1 }
 0x446   :  { %2268 = vst.msk [vmem:[%s5101_s7 + $0x4a8] sm:$0xff] %vm852_vm1, %v2072_v34 }
 0x447   :  { %v2074_v28 = vpop.f32.mrf.mxu1 }
 0x448   :  { %2269 = vst [vmem:[%s5101_s7 + $0x4b0] sm:$0xff] %v2074_v28 }
 0x449   :  { %v2076_v11 = vpop.f32.mrf.mxu1 }
 0x44a   :  { %2270 = vst.msk [vmem:[%s5101_s7 + $0x4b8] sm:$0xff] %vm852_vm1, %v2076_v11 }
 0x44b   :  { %v2080_v39 = vpop.f32.mrf.mxu1 }
 0x44c   :  { %2271 = vst [vmem:[%s5101_s7 + $0x4c0] sm:$0xff] %v2080_v39 }
 0x44d   :  { %v2082_v21 = vpop.f32.mrf.mxu1 }
 0x44e   :  { %2272 = vst.msk [vmem:[%s5101_s7 + $0x4c8] sm:$0xff] %vm852_vm1, %v2082_v21 }
 0x44f   :  { %v2084_v12 = vpop.f32.mrf.mxu1 }
 0x450   :  { %2273 = vst [vmem:[%s5101_s7 + $0x4d0] sm:$0xff] %v2084_v12 }
 0x451   :  { %v2086_v7 = vpop.f32.mrf.mxu1 }
 0x452   :  { %2274 = vst.msk [vmem:[%s5101_s7 + $0x4d8] sm:$0xff] %vm852_vm1, %v2086_v7 }
 0x453   :  { %v2090_v61 = vpop.f32.mrf.mxu1 }
 0x454   :  { %2275 = vst [vmem:[%s5101_s7 + $0x4e0] sm:$0xff] %v2090_v61 }
 0x455   :  { %v2092_v10 = vpop.f32.mrf.mxu1 }
 0x456   :  { %2276 = vst.msk [vmem:[%s5101_s7 + $0x4e8] sm:$0xff] %vm852_vm1, %v2092_v10 }
 0x457   :  { %v2094_v60 = vpop.f32.mrf.mxu1 }
 0x458   :  { %2277 = vst [vmem:[%s5101_s7 + $0x4f0] sm:$0xff] %v2094_v60 }
 0x459   :  { %v2096_v47 = vpop.f32.mrf.mxu1 }
 0x45a   :  { %2278 = vst.msk [vmem:[%s5101_s7 + $0x4f8] sm:$0xff] %vm852_vm1, %v2096_v47 }
 0x45b   :  { %v2100_v44 = vpop.f32.mrf.mxu1 }
 0x45c   :  { %2279 = vst [vmem:[%s5101_s7 + $0x500] sm:$0xff] %v2100_v44 }
 0x45d   :  { %v2102_v24 = vpop.f32.mrf.mxu1 }
 0x45e   :  { %2280 = vst.msk [vmem:[%s5101_s7 + $0x508] sm:$0xff] %vm852_vm1, %v2102_v24 }
 0x45f   :  { %v2104_v55 = vpop.f32.mrf.mxu1 }
 0x460   :  { %2281 = vst [vmem:[%s5101_s7 + $0x510] sm:$0xff] %v2104_v55 }
 0x461   :  { %v2106_v3 = vpop.f32.mrf.mxu1 }
 0x462   :  { %2282 = vst.msk [vmem:[%s5101_s7 + $0x518] sm:$0xff] %vm852_vm1, %v2106_v3 }
 0x463   :  { %v2110_v36 = vpop.f32.mrf.mxu1 }
 0x464   :  { %2283 = vst [vmem:[%s5101_s7 + $0x520] sm:$0xff] %v2110_v36 }
 0x465   :  { %v2112_v9 = vpop.f32.mrf.mxu1 }
 0x466   :  { %2284 = vst.msk [vmem:[%s5101_s7 + $0x528] sm:$0xff] %vm852_vm1, %v2112_v9 }
 0x467   :  { %v2114_v51 = vpop.f32.mrf.mxu1 }
 0x468   :  { %2285 = vst [vmem:[%s5101_s7 + $0x530] sm:$0xff] %v2114_v51 }
 0x469   :  { %v2116_v58 = vpop.f32.mrf.mxu1 }
 0x46a   :  { %2286 = vst.msk [vmem:[%s5101_s7 + $0x538] sm:$0xff] %vm852_vm1, %v2116_v58 }

</bundles_post_ra>
